<compile_context>
chip_gen: v7x
topology: tpu7x:2x2x1
jax: 0.10.0
libtpu: 0.0.40
codegen_flags: <defaults>
</compile_context>

<pallas_src>
import jax
import jax.numpy as jnp
from jax import lax
from jax.experimental import pallas as pl
from jax.experimental.pallas import tpu as pltpu

BN_EPS = 1e-5
HP = 128          # lane-aligned hidden width (pad hidden -> 128; 256 is better on v6e/v7x once H grows)
KP = HP           # packed contraction width (features / hidden padded to KP)


# ------------------------------- kernel --------------------------------------
def gcnn_kernel(x_ref, a_ref, mask_ref, w_ref, b_ref, out_ref):
    x = x_ref[...]          # [NP, KP] f32 node features (zero-padded)
    A = a_ref[...]          # [NP, NP] bf16 dense adjacency, A[dst, src] = edge weight

    # 3 x (GraphConv + folded BatchNorm + ReLU): 2 bf16 MXU matmuls / layer, f32 accum.
    for i in range(3):
        w = w_ref[i]                                   # [KP, 2*HP] bf16 = [W_rel' | W_root']
        b = b_ref[i:i + 1, :]                          # [1, HP]  f32 folded bias
        t = jnp.dot(x.astype(jnp.bfloat16), w,
                    preferred_element_type=jnp.float32)               # [NP, 2*HP]
        h = (jnp.dot(A, t[:, :HP].astype(jnp.bfloat16),
                     preferred_element_type=jnp.float32)              # A @ (x W_rel')
             + t[:, HP:]                                              # x W_root'
             + b)
        x = jnp.maximum(h, 0.0)                                       # [NP, HP] f32 (VPU stays f32)

    # global_max_pool.  Multiply-masking is valid because x >= 0 after the f32 ReLU
    # and every graph is non-empty; padded nodes carry mask == 0 in every graph.
    # TODO(synk): switch to per-graph pl.ds-sliced sublane max once G grows large.
    mask = mask_ref[...]                                              # [G, NP] f32 one-hot
    pooled = jnp.max(x[None, :, :] * mask[:, :, None], axis=1)        # [G, HP]

    # TODO(synk): F.dropout(p=0.6) is identity here (inference semantics).
    w1 = w_ref[3][:, :HP]                                             # [HP, HP] bf16 (cols>=16 zero)
    y = jnp.dot(pooled.astype(jnp.bfloat16), w1,
                preferred_element_type=jnp.float32) + b_ref[3:4, :]
    y = jnp.maximum(y, 0.0)
    w2 = w_ref[4][:, :HP]                                             # [HP, HP] bf16 (col 0 valid)
    z = jnp.dot(y.astype(jnp.bfloat16), w2,
                preferred_element_type=jnp.float32) + b_ref[4:5, :]
    out_ref[...] = jax.nn.sigmoid(z)    # [G, 128] lane-dense store; wrapper keeps column 0


# ------------------------- wrapper: fold + pack + call ------------------------
def _fold_and_pack(params, feat, hidden):
    """Fold BatchNorm (running stats) + lin_rel bias into the GraphConv weights and
    pack everything into ONE bf16 weight slab and ONE f32 bias slab (done in XLA)."""
    (w1r, b1, w1s, g1, be1, m1, v1,
     w2r, b2, w2s, g2, be2, m2, v2,
     w3r, b3, w3s, g3, be3, m3, v3,
     wl1, bl1, wl2, bl2) = params
    assert feat <= KP and hidden <= HP

    def fold(wr, br, ws, g, be, m, v):
        scale = g * lax.rsqrt(v + BN_EPS)                   # [1, H]
        k = wr.shape[0]
        wp = jnp.zeros((KP, 2 * HP), jnp.float32)
        wp = wp.at[:k, :hidden].set(wr * scale)             # rel half, lane-aligned at 0
        wp = wp.at[:k, HP:HP + hidden].set(ws * scale)      # root half, lane-aligned at HP
        bf = jnp.zeros((1, HP), jnp.float32).at[:, :hidden].set((br - m) * scale + be)
        return wp, bf

    w1p, bf1 = fold(w1r, b1, w1s, g1, be1, m1, v1)
    w2p, bf2 = fold(w2r, b2, w2s, g2, be2, m2, v2)
    w3p, bf3 = fold(w3r, b3, w3s, g3, be3, m3, v3)

    h1w = jnp.zeros((KP, 2 * HP), jnp.float32).at[:hidden, :wl1.shape[1]].set(wl1)
    h2w = jnp.zeros((KP, 2 * HP), jnp.float32).at[:wl2.shape[0], :wl2.shape[1]].set(wl2)

    wslab = jnp.stack([w1p, w2p, w3p, h1w, h2w]).astype(jnp.bfloat16)   # [5, KP, 2*HP] bf16

    bslab = jnp.zeros((8, HP), jnp.float32)
    bslab = bslab.at[0:1, :].set(bf1).at[1:2, :].set(bf2).at[2:3, :].set(bf3)
    bslab = bslab.at[3, :bl1.shape[1]].set(bl1[0])
    bslab = bslab.at[4, :bl2.shape[1]].set(bl2[0])                      # [8, HP] f32
    return wslab, bslab


def gcnn_forward(x, A, mask, params):
    N, feat = x.shape
    G = mask.shape[0]
    NP = max(128, ((N + 127) // 128) * 128)     # MXU-friendly node padding

    wslab, bslab = _fold_and_pack(params, feat, params[3].shape[1])

    xp = jnp.zeros((NP, KP), jnp.float32).at[:N, :feat].set(x)
    Ap = jnp.zeros((NP, NP), jnp.float32).at[:N, :N].set(A).astype(jnp.bfloat16)
    maskp = jnp.zeros((G, NP), jnp.float32).at[:, :N].set(mask)

    inputs = (xp, Ap, maskp, wslab, bslab)
    flops = (3 * (2 * NP * KP * 2 * HP + 2 * NP * NP * HP) + 2 * (2 * G * HP * HP))
    bytes_accessed = sum(int(a.size) * a.dtype.itemsize for a in inputs) + G * HP * 4

    vmem = pl.BlockSpec(memory_space=pltpu.MemorySpace.VMEM)
    out = pl.pallas_call(
        gcnn_kernel,
        out_shape=jax.ShapeDtypeStruct((G, HP), jnp.float32),
        in_specs=[vmem] * len(inputs),
        out_specs=vmem,
        compiler_params=pltpu.CompilerParams(vmem_limit_bytes=32 * 1024 * 1024),
        cost_estimate=pl.CostEstimate(flops=flops, transcendentals=G * HP,
                                      bytes_accessed=bytes_accessed),
    )(*inputs)
    return out[:, :1]                            # (G, 1)


# ---------------- deterministic parameter initialization ----------------
def _lin_init(key, fan_in, fan_out):
    # PyTorch-style uniform(-1/sqrt(fan_in), 1/sqrt(fan_in)); stored [in, out].
    kw, kb = jax.random.split(key)
    s = 1.0 / jnp.sqrt(jnp.float32(fan_in))
    w = jax.random.uniform(kw, (fan_in, fan_out), jnp.float32, -s, s)
    b = jax.random.uniform(kb, (1, fan_out), jnp.float32, -s, s)
    return w, b


def init_params(key, feat, hidden):
    keys = jax.random.split(key, 8)
    params = []
    in_dims = [feat, hidden, hidden]
    for i in range(3):
        w_rel, b_rel = _lin_init(keys[2 * i], in_dims[i], hidden)
        w_root, _ = _lin_init(keys[2 * i + 1], in_dims[i], hidden)   # lin_root has no bias
        gamma = jnp.ones((1, hidden), jnp.float32)
        beta = jnp.zeros((1, hidden), jnp.float32)
        r_mean = jnp.zeros((1, hidden), jnp.float32)
        r_var = jnp.ones((1, hidden), jnp.float32)
        params += [w_rel, b_rel, w_root, gamma, beta, r_mean, r_var]
    wl1, bl1 = _lin_init(keys[6], hidden, 16)
    wl2, bl2 = _lin_init(keys[7], 16, 1)
    params += [wl1, bl1, wl2, bl2]
    return tuple(params)


# ---------------- pure-JAX reference (correctness check) ----------------
def gcnn_reference(x, A, mask, params):
    (w1r, b1, w1s, g1, be1, m1, v1,
     w2r, b2, w2s, g2, be2, m2, v2,
     w3r, b3, w3s, g3, be3, m3, v3,
     wl1, bl1, wl2, bl2) = params

    def layer(x, wr, br, ws, g, be, m, v):
        h = (A @ x) @ wr + br + x @ ws
        h = (h - m) / jnp.sqrt(v + BN_EPS) * g + be
        return jnp.maximum(h, 0.0)

    x = layer(x, w1r, b1, w1s, g1, be1, m1, v1)
    x = layer(x, w2r, b2, w2s, g2, be2, m2, v2)
    x = layer(x, w3r, b3, w3s, g3, be3, m3, v3)
    pooled = jnp.max(jnp.where(mask[:, :, None] > 0, x[None], -1e30), axis=1)
    y = jnp.maximum(pooled @ wl1 + bl1, 0.0)
    return jax.nn.sigmoid(y @ wl2 + bl2)


if __name__ == "__main__":
    N, F, H, G, E_PER = 16, 8, 32, 2, 20   # 16 nodes, 8 feats, 32 hidden, 2 graphs
    key = jax.random.PRNGKey(0)
    k_x, k_s0, k_d0, k_s1, k_d1, k_w, k_p = jax.random.split(key, 7)

    x = jax.random.normal(k_x, (N, F), jnp.float32)

    # edges kept within each graph (graph 0: nodes 0..7, graph 1: nodes 8..15)
    src = jnp.concatenate([jax.random.randint(k_s0, (E_PER,), 0, 8),
                           jax.random.randint(k_s1, (E_PER,), 0, 8) + 8])
    dst = jnp.concatenate([jax.random.randint(k_d0, (E_PER,), 0, 8),
                           jax.random.randint(k_d1, (E_PER,), 0, 8) + 8])
    edge_index = jnp.stack([src, dst])                       # [2, E]
    edge_attr = jax.random.uniform(k_w, (2 * E_PER,), jnp.float32, 0.1, 1.0)
    batch = jnp.concatenate([jnp.zeros(8, jnp.int32), jnp.ones(8, jnp.int32)])

    # glue: densify graph + pooling mask
    A = jnp.zeros((N, N), jnp.float32).at[edge_index[1], edge_index[0]].add(edge_attr)
    mask = (batch[None, :] == jnp.arange(G, dtype=jnp.int32)[:, None]).astype(jnp.float32)

    params = init_params(k_p, F, H)

    out = gcnn_forward(x, A, mask, params)
    out = jax.block_until_ready(out)

    ref = gcnn_reference(x, A, mask, params)
    assert out.shape == (G, 1)
    # bf16 MXU operands (f32 accumulation) -> looser tolerance than the pure-f32 version.
    assert jnp.allclose(out, ref, atol=2e-2, rtol=2e-2), (out, ref)
    print("KERNEL_OK")
</pallas_src>

<mosaic_0001>
module attributes {stable_mosaic.version = 11 : i64} {
  func.func @gcnn_kernel(%arg0: memref<128x128xf32, #tpu.memory_space<vmem>>, %arg1: memref<128x128xbf16, #tpu.memory_space<vmem>>, %arg2: memref<2x128xf32, #tpu.memory_space<vmem>>, %arg3: memref<5x128x256xbf16, #tpu.memory_space<vmem>>, %arg4: memref<8x128xf32, #tpu.memory_space<vmem>>, %arg5: memref<2x128xf32, #tpu.memory_space<vmem>>) attributes {dimension_semantics = [], scalar_prefetch = 0 : i64, scratch_operands = 0 : i64, tpu.core_type = #tpu.core_type<tc>} {
    %c0 = arith.constant 0 : index
    %c0_0 = arith.constant 0 : index
    %0 = vector.load %arg0[%c0, %c0_0] : memref<128x128xf32, #tpu.memory_space<vmem>>, vector<128x128xf32>
    %c0_1 = arith.constant 0 : index
    %c0_2 = arith.constant 0 : index
    %1 = vector.load %arg1[%c0_1, %c0_2] : memref<128x128xbf16, #tpu.memory_space<vmem>>, vector<128x128xbf16>
    %c0_3 = arith.constant 0 : index
    %c0_4 = arith.constant 0 : index
    %c0_5 = arith.constant 0 : index
    %2 = vector.load %arg3[%c0_3, %c0_4, %c0_5] : memref<5x128x256xbf16, #tpu.memory_space<vmem>>, vector<1x128x256xbf16>
    %3 = vector.shape_cast %2 : vector<1x128x256xbf16> to vector<128x256xbf16>
    %c0_6 = arith.constant 0 : index
    %c0_7 = arith.constant 0 : index
    %4 = vector.load %arg4[%c0_6, %c0_7] : memref<8x128xf32, #tpu.memory_space<vmem>>, vector<1x128xf32>
    %5 = arith.truncf %0 : vector<128x128xf32> to vector<128x128xbf16>
    %cst = arith.constant dense<0.000000e+00> : vector<128x256xf32>
    %6 = tpu.matmul %5, %3, %cst {dimension_numbers = #tpu.dot_dimension_numbers<[1], [0], [0], [1], [0, 0, 1, 1], [], []>} : vector<128x128xbf16>, vector<128x256xbf16>, vector<128x256xf32> -> vector<128x256xf32>
    %7 = vector.extract_strided_slice %6 {offsets = [0, 0], sizes = [128, 128], strides = [1, 1]} : vector<128x256xf32> to vector<128x128xf32>
    %8 = arith.truncf %7 : vector<128x128xf32> to vector<128x128xbf16>
    %cst_8 = arith.constant dense<0.000000e+00> : vector<128x128xf32>
    %9 = tpu.matmul %1, %8, %cst_8 {dimension_numbers = #tpu.dot_dimension_numbers<[1], [0], [0], [1], [0, 0, 1, 1], [], []>} : vector<128x128xbf16>, vector<128x128xbf16>, vector<128x128xf32> -> vector<128x128xf32>
    %10 = vector.extract_strided_slice %6 {offsets = [0, 128], sizes = [128, 128], strides = [1, 1]} : vector<128x256xf32> to vector<128x128xf32>
    %11 = arith.addf %9, %10 : vector<128x128xf32>
    %12 = vector.broadcast %4 : vector<1x128xf32> to vector<128x128xf32>
    %13 = arith.addf %11, %12 : vector<128x128xf32>
    %cst_9 = arith.constant 0.000000e+00 : f32
    %14 = vector.broadcast %cst_9 : f32 to vector<128x128xf32>
    %15 = arith.maximumf %13, %14 : vector<128x128xf32>
    %c1 = arith.constant 1 : index
    %c0_10 = arith.constant 0 : index
    %c0_11 = arith.constant 0 : index
    %16 = vector.load %arg3[%c1, %c0_10, %c0_11] : memref<5x128x256xbf16, #tpu.memory_space<vmem>>, vector<1x128x256xbf16>
    %17 = vector.shape_cast %16 : vector<1x128x256xbf16> to vector<128x256xbf16>
    %c1_12 = arith.constant 1 : index
    %c0_13 = arith.constant 0 : index
    %18 = vector.load %arg4[%c1_12, %c0_13] : memref<8x128xf32, #tpu.memory_space<vmem>>, vector<1x128xf32>
    %19 = arith.truncf %15 : vector<128x128xf32> to vector<128x128xbf16>
    %cst_14 = arith.constant dense<0.000000e+00> : vector<128x256xf32>
    %20 = tpu.matmul %19, %17, %cst_14 {dimension_numbers = #tpu.dot_dimension_numbers<[1], [0], [0], [1], [0, 0, 1, 1], [], []>} : vector<128x128xbf16>, vector<128x256xbf16>, vector<128x256xf32> -> vector<128x256xf32>
    %21 = vector.extract_strided_slice %20 {offsets = [0, 0], sizes = [128, 128], strides = [1, 1]} : vector<128x256xf32> to vector<128x128xf32>
    %22 = arith.truncf %21 : vector<128x128xf32> to vector<128x128xbf16>
    %cst_15 = arith.constant dense<0.000000e+00> : vector<128x128xf32>
    %23 = tpu.matmul %1, %22, %cst_15 {dimension_numbers = #tpu.dot_dimension_numbers<[1], [0], [0], [1], [0, 0, 1, 1], [], []>} : vector<128x128xbf16>, vector<128x128xbf16>, vector<128x128xf32> -> vector<128x128xf32>
    %24 = vector.extract_strided_slice %20 {offsets = [0, 128], sizes = [128, 128], strides = [1, 1]} : vector<128x256xf32> to vector<128x128xf32>
    %25 = arith.addf %23, %24 : vector<128x128xf32>
    %26 = vector.broadcast %18 : vector<1x128xf32> to vector<128x128xf32>
    %27 = arith.addf %25, %26 : vector<128x128xf32>
    %cst_16 = arith.constant 0.000000e+00 : f32
    %28 = vector.broadcast %cst_16 : f32 to vector<128x128xf32>
    %29 = arith.maximumf %27, %28 : vector<128x128xf32>
    %c2 = arith.constant 2 : index
    %c0_17 = arith.constant 0 : index
    %c0_18 = arith.constant 0 : index
    %30 = vector.load %arg3[%c2, %c0_17, %c0_18] : memref<5x128x256xbf16, #tpu.memory_space<vmem>>, vector<1x128x256xbf16>
    %31 = vector.shape_cast %30 : vector<1x128x256xbf16> to vector<128x256xbf16>
    %c2_19 = arith.constant 2 : index
    %c0_20 = arith.constant 0 : index
    %32 = vector.load %arg4[%c2_19, %c0_20] : memref<8x128xf32, #tpu.memory_space<vmem>>, vector<1x128xf32>
    %33 = arith.truncf %29 : vector<128x128xf32> to vector<128x128xbf16>
    %cst_21 = arith.constant dense<0.000000e+00> : vector<128x256xf32>
    %34 = tpu.matmul %33, %31, %cst_21 {dimension_numbers = #tpu.dot_dimension_numbers<[1], [0], [0], [1], [0, 0, 1, 1], [], []>} : vector<128x128xbf16>, vector<128x256xbf16>, vector<128x256xf32> -> vector<128x256xf32>
    %35 = vector.extract_strided_slice %34 {offsets = [0, 0], sizes = [128, 128], strides = [1, 1]} : vector<128x256xf32> to vector<128x128xf32>
    %36 = arith.truncf %35 : vector<128x128xf32> to vector<128x128xbf16>
    %cst_22 = arith.constant dense<0.000000e+00> : vector<128x128xf32>
    %37 = tpu.matmul %1, %36, %cst_22 {dimension_numbers = #tpu.dot_dimension_numbers<[1], [0], [0], [1], [0, 0, 1, 1], [], []>} : vector<128x128xbf16>, vector<128x128xbf16>, vector<128x128xf32> -> vector<128x128xf32>
    %38 = vector.extract_strided_slice %34 {offsets = [0, 128], sizes = [128, 128], strides = [1, 1]} : vector<128x256xf32> to vector<128x128xf32>
    %39 = arith.addf %37, %38 : vector<128x128xf32>
    %40 = vector.broadcast %32 : vector<1x128xf32> to vector<128x128xf32>
    %41 = arith.addf %39, %40 : vector<128x128xf32>
    %cst_23 = arith.constant 0.000000e+00 : f32
    %42 = vector.broadcast %cst_23 : f32 to vector<128x128xf32>
    %43 = arith.maximumf %41, %42 : vector<128x128xf32>
    %c0_24 = arith.constant 0 : index
    %c0_25 = arith.constant 0 : index
    %44 = vector.load %arg2[%c0_24, %c0_25] : memref<2x128xf32, #tpu.memory_space<vmem>>, vector<2x128xf32>
    %45 = vector.shape_cast %43 : vector<128x128xf32> to vector<1x128x128xf32>
    %46 = vector.shape_cast %44 : vector<2x128xf32> to vector<2x128x1xf32>
    %47 = vector.broadcast %45 : vector<1x128x128xf32> to vector<2x128x128xf32>
    %48 = vector.broadcast %46 : vector<2x128x1xf32> to vector<2x128x128xf32>
    %49 = arith.mulf %47, %48 : vector<2x128x128xf32>
    %cst_26 = arith.constant dense<0xFF800000> : vector<2x128xf32>
    %50 = vector.multi_reduction <maximumf>, %49, %cst_26 [1] : vector<2x128x128xf32> to vector<2x128xf32>
    %c3 = arith.constant 3 : index
    %c0_27 = arith.constant 0 : index
    %c0_28 = arith.constant 0 : index
    %51 = vector.load %arg3[%c3, %c0_27, %c0_28] : memref<5x128x256xbf16, #tpu.memory_space<vmem>>, vector<1x128x256xbf16>
    %52 = vector.shape_cast %51 : vector<1x128x256xbf16> to vector<128x256xbf16>
    %53 = vector.extract_strided_slice %52 {offsets = [0, 0], sizes = [128, 128], strides = [1, 1]} : vector<128x256xbf16> to vector<128x128xbf16>
    %54 = arith.truncf %50 : vector<2x128xf32> to vector<2x128xbf16>
    %cst_29 = arith.constant dense<0.000000e+00> : vector<2x128xf32>
    %55 = tpu.matmul %54, %53, %cst_29 {dimension_numbers = #tpu.dot_dimension_numbers<[1], [0], [0], [1], [0, 0, 1, 1], [], []>} : vector<2x128xbf16>, vector<128x128xbf16>, vector<2x128xf32> -> vector<2x128xf32>
    %c3_30 = arith.constant 3 : index
    %c0_31 = arith.constant 0 : index
    %56 = vector.load %arg4[%c3_30, %c0_31] : memref<8x128xf32, #tpu.memory_space<vmem>>, vector<1x128xf32>
    %57 = vector.broadcast %56 : vector<1x128xf32> to vector<2x128xf32>
    %58 = arith.addf %55, %57 : vector<2x128xf32>
    %cst_32 = arith.constant 0.000000e+00 : f32
    %59 = vector.broadcast %cst_32 : f32 to vector<2x128xf32>
    %60 = arith.maximumf %58, %59 : vector<2x128xf32>
    %c4 = arith.constant 4 : index
    %c0_33 = arith.constant 0 : index
    %c0_34 = arith.constant 0 : index
    %61 = vector.load %arg3[%c4, %c0_33, %c0_34] : memref<5x128x256xbf16, #tpu.memory_space<vmem>>, vector<1x128x256xbf16>
    %62 = vector.shape_cast %61 : vector<1x128x256xbf16> to vector<128x256xbf16>
    %63 = vector.extract_strided_slice %62 {offsets = [0, 0], sizes = [128, 128], strides = [1, 1]} : vector<128x256xbf16> to vector<128x128xbf16>
    %64 = arith.truncf %60 : vector<2x128xf32> to vector<2x128xbf16>
    %cst_35 = arith.constant dense<0.000000e+00> : vector<2x128xf32>
    %65 = tpu.matmul %64, %63, %cst_35 {dimension_numbers = #tpu.dot_dimension_numbers<[1], [0], [0], [1], [0, 0, 1, 1], [], []>} : vector<2x128xbf16>, vector<128x128xbf16>, vector<2x128xf32> -> vector<2x128xf32>
    %c4_36 = arith.constant 4 : index
    %c0_37 = arith.constant 0 : index
    %66 = vector.load %arg4[%c4_36, %c0_37] : memref<8x128xf32, #tpu.memory_space<vmem>>, vector<1x128xf32>
    %67 = vector.broadcast %66 : vector<1x128xf32> to vector<2x128xf32>
    %68 = arith.addf %65, %67 : vector<2x128xf32>
    %69 = arith.negf %68 : vector<2x128xf32>
    %70 = math.exp %69 : vector<2x128xf32>
    %cst_38 = arith.constant 1.000000e+00 : f32
    %71 = vector.broadcast %cst_38 : f32 to vector<2x128xf32>
    %72 = arith.addf %71, %70 : vector<2x128xf32>
    %73 = arith.divf %71, %72 : vector<2x128xf32>
    %c0_39 = arith.constant 0 : index
    %c0_40 = arith.constant 0 : index
    %74 = vector.load %arg5[%c0_39, %c0_40] : memref<2x128xf32, #tpu.memory_space<vmem>>, vector<2x128xf32>
    tpu.vector_store %arg5[%c0_39, %c0_40], %73 {strides = array<i32>} : memref<2x128xf32, #tpu.memory_space<vmem>>, vector<2x128xf32>,
    return
  }
}

</mosaic_0001>

<bundles_post_ra>
// kernel: tpu_custom_call.1
= control target key start
LH: loop header
LB: loop body
LE: loop exit
PB: predicated region body
PF: predicated region fallthrough
CT: control target
= control target key end

     0   :  { %10 = vsyncpa [#allocation3], 0  ;;  %s2588_s0 = inlined_call_operand.hbm [shape: f32[128,128], index: 0, kind: input, shape index: {}]   ;;  %s2589_s1 = inlined_call_operand.hbm [shape: bf16[128,128], index: 1, kind: input, shape index: {}]   ;;  %s2590_s2 = inlined_call_operand.vmem [shape: f32[2,128], index: 2, kind: input, shape index: {}]   ;;  %s2591_s3 = inlined_call_operand.hbm [shape: bf16[5,128,256], index: 3, kind: input, shape index: {}]   ;;  %s2592_s4 = inlined_call_operand.vmem [shape: f32[8,128], index: 4, kind: input, shape index: {}]   ;;  %s2593_s5 = inlined_call_operand.hbm [shape: f32[2,128], index: 5, kind: output, shape index: {}]  }
   0x1   :  { %11 = vsyncpa [#allocation6], 0 }
   0x2   :  { %12 = vsyncpa [#allocation4], 0  ;;  %s2171_s18 = smov [#allocation5]   ;;  %s2077_s22 = scalar_lea.hbm %s2589_s1, 1024 }
   0x3   :  { %s30_s19 = sshll.u32 %s2171_s18, 4  ;;  %p2078_p0 = scmp.ne.s32.totalorder %s2589_s1, %s2077_s22  ;;  %s31_s19 = int_to_ptr.vmem [resolvable:$true] %s30_s19 }
   0x4   :  { %p2081_p1 = scmp.lt.u32.totalorder %s2077_s22, %s2589_s1 }
   0x6   :  { %p2083_p2 = pnand %p2081_p1, %p2078_p0 }
   0x8   :  { %2086 = shalt.err (!%p2083_p2)
}
   0x9   :  { %s2087_s27 = scalar_lea.vmem %s31_s19, 1024  ;;  %p2092_p4 = scmp.lt.s32.totalorder %s31_s19, %s31_s19 }
   0xa   :  { %p2088_p3 = scmp.ne.s32.totalorder %s31_s19, %s2087_s27  ;;  %p2093_p5 = scmp.lt.s32.totalorder %s2087_s27, %s2087_s27 }
   0xc   :  { %p2094_p6 = por %p2093_p5, %p2092_p4 }
   0xe   :  { %p2095_p7 = pnand %p2094_p6, %p2088_p3 }
  0x10   :  { %2098 = shalt.err (!%p2095_p7)
}
  0x11   :  { %s2172_s28 = smov 64   ;;  %s2173_s29 = smov 4  }
  0x12   :  { %36 = dma.hbm_to_vmem [thread:$0]  %s2589_s1, 1024, %s31_s19, [#allocation6], %s2172_s28, %s2172_s28, %s2173_s29  }
  0x13   :  { %s2174_s7 = smov [#allocation2]   ;;  %s2099_s11 = scalar_lea.hbm %s2588_s0, 2048 }
  0x14   :  { %s18_s8 = sshll.u32 %s2174_s7, 4  ;;  %p2100_p8 = scmp.ne.s32.totalorder %s2588_s0, %s2099_s11  ;;  %s19_s8 = int_to_ptr.vmem [resolvable:$true] %s18_s8 }
  0x15   :  { %p2103_p9 = scmp.lt.u32.totalorder %s2099_s11, %s2588_s0 }
  0x17   :  { %p2105_p10 = pnand %p2103_p9, %p2100_p8 }
  0x19   :  { %2108 = shalt.err (!%p2105_p10)
}
  0x1a   :  { %s2109_s16 = scalar_lea.vmem %s19_s8, 2048  ;;  %p2114_p12 = scmp.lt.s32.totalorder %s19_s8, %s19_s8 }
  0x1b   :  { %p2110_p11 = scmp.ne.s32.totalorder %s19_s8, %s2109_s16  ;;  %p2115_p13 = scmp.lt.s32.totalorder %s2109_s16, %s2109_s16 }
  0x1d   :  { %p2116_p0 = por %p2115_p13, %p2114_p12 }
  0x1f   :  { %p2117_p1 = pnand %p2116_p0, %p2110_p11 }
  0x21   :  { %2120 = shalt.err (!%p2117_p1)
}
  0x22   :  { %s2175_s1 = smov 128   ;;  %s2176_s17 = smov 8  }
  0x23   :  { %24 = dma.hbm_to_vmem [thread:$0]  %s2588_s0, 2048, %s19_s8, [#allocation3], %s2175_s1, %s2175_s1, %s2176_s17  }
  0x24   :  { %s2177_s20 = smov [#allocation7]   ;;  %s2121_s24 = scalar_lea.hbm %s2591_s3, 10240 }
  0x25   :  { %s44_s21 = sshll.u32 %s2177_s20, 4  ;;  %p2122_p2 = scmp.ne.s32.totalorder %s2591_s3, %s2121_s24  ;;  %s45_s21 = int_to_ptr.vmem [resolvable:$true] %s44_s21 }
  0x26   :  { %p2125_p3 = scmp.lt.u32.totalorder %s2121_s24, %s2591_s3 }
  0x28   :  { %p2127_p4 = pnand %p2125_p3, %p2122_p2 }
  0x2a   :  { %2130 = shalt.err (!%p2127_p4)
}
  0x2b   :  { %s2131_s29 = scalar_lea.vmem %s45_s21, 10240  ;;  %p2136_p6 = scmp.lt.s32.totalorder %s45_s21, %s45_s21 }
  0x2c   :  { %p2132_p5 = scmp.ne.s32.totalorder %s45_s21, %s2131_s29  ;;  %p2137_p7 = scmp.lt.s32.totalorder %s2131_s29, %s2131_s29 }
  0x2e   :  { %p2138_p8 = por %p2137_p7, %p2136_p6 }
  0x30   :  { %p2139_p9 = pnand %p2138_p8, %p2132_p5 }
  0x32   :  { %2142 = shalt.err (!%p2139_p9)
}
  0x33   :  { %50 = dma.hbm_to_vmem [thread:$0]  %s2591_s3, 10240, %s45_s21, [#allocation6], %s2175_s1, %s2175_s1, %s2176_s17  }
  0x34   :  { %2165 = dma.done.wait [#allocation3], 2048  }
  0x35   :  { %2166 = vsyncadd [#allocation3], 4294965248 }
  0x36   :  { %2167 = dma.done.wait [#allocation6], 11264  }
  0x37   :  { %2168 = vsyncadd [#allocation6], 4294956032  ;;  %v2178_v0 = vmov 0   ;;  %v1977_v1 = vld [vmem:[#allocation7 + $0x4] ss:$8 sps:$4 sm:$0xff]   ;;  %v65_v20 = vld [vmem:[#allocation2 + $0x10] sm:$0xff] }
  0x38   :  { %232 = vmatprep.mubr.bf16.mxu0 %v2178_v0  ;;  %v1979_v2 = vld [vmem:[#allocation7] ss:$8 sps:$4 sm:$0xff]   ;;  %200 = vmatprep.subr.bf16.mxu0 %v1977_v1  ;;  %v1980_v3 = vld [vmem:[#allocation7 + $0x14] ss:$8 sps:$4 sm:$0xff]   ;;  %v1982_v4 = vld [vmem:[#allocation7 + $0x10] ss:$8 sps:$4 sm:$0xff]  }
  0x39   :  { %201 = vmatpush1.bf16.msra.mxu0 %v1979_v2  ;;  %v1983_v5 = vld [vmem:[#allocation7 + $0x24] ss:$8 sps:$4 sm:$0xff]   ;;  %v1985_v6 = vld [vmem:[#allocation7 + $0x20] ss:$8 sps:$4 sm:$0xff]   ;;  %v1986_v7 = vld [vmem:[#allocation7 + $0x34] ss:$8 sps:$4 sm:$0xff]  }
  0x3a   :  { %202 = vmatprep.subr.bf16.mxu0 %v1980_v3  ;;  %v1988_v8 = vld [vmem:[#allocation7 + $0x30] ss:$8 sps:$4 sm:$0xff]   ;;  %v1989_v9 = vld [vmem:[#allocation7 + $0x44] ss:$8 sps:$4 sm:$0xff]   ;;  %v1991_v10 = vld [vmem:[#allocation7 + $0x40] ss:$8 sps:$4 sm:$0xff]  }
  0x3b   :  { %v1992_v11 = vld [vmem:[#allocation7 + $0x54] ss:$8 sps:$4 sm:$0xff]   ;;  %v1994_v12 = vld [vmem:[#allocation7 + $0x50] ss:$8 sps:$4 sm:$0xff]   ;;  %v1995_v13 = vld [vmem:[#allocation7 + $0x64] ss:$8 sps:$4 sm:$0xff]  }
  0x3c   :  { %v1997_v14 = vld [vmem:[#allocation7 + $0x60] ss:$8 sps:$4 sm:$0xff]   ;;  %v1998_v15 = vld [vmem:[#allocation7 + $0x74] ss:$8 sps:$4 sm:$0xff]   ;;  %v2000_v16 = vld [vmem:[#allocation7 + $0x70] ss:$8 sps:$4 sm:$0xff]  }
  0x3d   :  { %203 = vmatpush1.bf16.msra.mxu0 %v1982_v4  ;;  %v63_v17 = vld [vmem:[#allocation2] sm:$0xff]  ;;  %v64_v18 = vld [vmem:[#allocation2 + $0x8] sm:$0xff]  ;;  %v66_v21 = vld [vmem:[#allocation2 + $0x18] sm:$0xff]  ;;  %vm2180_vm0 = vmmov 0   ;;  %vm1459_vm1 = vcmask 1041409   ;;  %s2181_s16 = smov [#allocation8]  }
  0x3e   :  { %204 = vmatprep.subr.bf16.mxu0 %v1983_v5  ;;  %v112_v19 = vpack.c.bf16 %v64_v18, %v63_v17  ;;  %v113_v22 = vpack.c.bf16 %v66_v21, %v65_v20  ;;  %v67_v23 = vld [vmem:[#allocation2 + $0x20] sm:$0xff]  ;;  %v68_v24 = vld [vmem:[#allocation2 + $0x28] sm:$0xff]  ;;  %v69_v26 = vld [vmem:[#allocation2 + $0x30] sm:$0xff]  ;;  %s1676_s1 = sshll.u32 %s2181_s16, 4  ;;  %s1677_s1 = int_to_ptr.vmem [resolvable:$true] %s1676_s1 }
  0x3f   :  { %v114_v25 = vpack.c.bf16 %v68_v24, %v67_v23  ;;  %v70_v27 = vld [vmem:[#allocation2 + $0x38] sm:$0xff]  ;;  %v71_v29 = vld [vmem:[#allocation2 + $0x40] sm:$0xff]  ;;  %v72_v30 = vld [vmem:[#allocation2 + $0x48] sm:$0xff]  ;;  %s2143_s17 = scalar_lea.vmem %s1677_s1, 32  ;;  %p2148_p11 = scmp.lt.s32.totalorder %s1677_s1, %s1677_s1 }
  0x40   :  { %v115_v28 = vpack.c.bf16 %v70_v27, %v69_v26  ;;  %v116_v31 = vpack.c.bf16 %v72_v30, %v71_v29  ;;  %v73_v32 = vld [vmem:[#allocation2 + $0x50] sm:$0xff]  ;;  %v74_v33 = vld [vmem:[#allocation2 + $0x58] sm:$0xff]  ;;  %v75_v35 = vld [vmem:[#allocation2 + $0x60] sm:$0xff]  ;;  %p2144_p10 = scmp.ne.s32.totalorder %s1677_s1, %s2143_s17  ;;  %p2149_p12 = scmp.lt.s32.totalorder %s2143_s17, %s2143_s17 }
  0x41   :  { %205 = vmatpush1.bf16.msra.mxu0 %v1985_v6  ;;  %v117_v34 = vpack.c.bf16 %v74_v33, %v73_v32  ;;  %v76_v36 = vld [vmem:[#allocation2 + $0x68] sm:$0xff]  ;;  %v77_v38 = vld [vmem:[#allocation2 + $0x70] sm:$0xff]  ;;  %v78_v39 = vld [vmem:[#allocation2 + $0x78] sm:$0xff] }
  0x42   :  { %206 = vmatprep.subr.bf16.mxu0 %v1986_v7  ;;  %v118_v37 = vpack.c.bf16 %v76_v36, %v75_v35  ;;  %v119_v40 = vpack.c.bf16 %v78_v39, %v77_v38  ;;  %v2256_v41 = vld [vmem:[#allocation5] sm:$0xff]   ;;  %v2292_v20 = vld [vmem:[#allocation5 + $0x8] sm:$0xff]   ;;  %v2294_v21 = vld [vmem:[#allocation5 + $0x10] sm:$0xff]   ;;  %p2150_p13 = por %p2149_p12, %p2148_p11 }
  0x43   :  { %1846 = vmatprep.mubr.bf16.mxu1 %v2256_v41  ;;  %v2014_v23 = vld [vmem:[#allocation7 + $0x94] ss:$8 sps:$4 sm:$0xff]   ;;  %v2012_v24 = vld [vmem:[#allocation7 + $0x90] ss:$8 sps:$4 sm:$0xff]   ;;  %v2300_v27 = vld [vmem:[#allocation5 + $0x20] sm:$0xff]  }
  0x44   :  { %v2298_v26 = vld [vmem:[#allocation5 + $0x18] sm:$0xff]   ;;  %v2304_v32 = vld [vmem:[#allocation5 + $0x28] sm:$0xff]   ;;  %v2306_v33 = vld [vmem:[#allocation5 + $0x30] sm:$0xff]   ;;  %p2151_p0 = pnand %p2150_p13, %p2144_p10 }
  0x45   :  { %207 = vmatpush1.bf16.msra.mxu0 %v1988_v8  ;;  %v2020_v29 = vld [vmem:[#allocation7 + $0xb4] ss:$8 sps:$4 sm:$0xff]   ;;  %v2018_v30 = vld [vmem:[#allocation7 + $0xb0] ss:$8 sps:$4 sm:$0xff]   ;;  %v2029_v38 = vld [vmem:[#allocation7 + $0xe4] ss:$8 sps:$4 sm:$0xff]  }
  0x46   :  { %208 = vmatprep.subr.bf16.mxu0 %v1989_v9  ;;  %v2310_v35 = vld [vmem:[#allocation5 + $0x38] sm:$0xff]   ;;  %v2027_v39 = vld [vmem:[#allocation7 + $0xe0] ss:$8 sps:$4 sm:$0xff]  }
  0x47   :  { %v2026_v36 = vld [vmem:[#allocation7 + $0xd4] ss:$8 sps:$4 sm:$0xff]  }
  0x49   :  { %209 = vmatpush1.bf16.msra.mxu0 %v1991_v10 }
  0x4a   :  { %210 = vmatprep.subr.bf16.mxu0 %v1992_v11 }
  0x4d   :  { %211 = vmatpush1.bf16.msra.mxu0 %v1994_v12 }
  0x4e   :  { %212 = vmatprep.subr.bf16.mxu0 %v1995_v13 }
  0x51   :  { %213 = vmatpush1.bf16.msra.mxu0 %v1997_v14 }
  0x52   :  { %214 = vmatprep.subr.bf16.mxu0 %v1998_v15 }
  0x55   :  { %215 = vmatpush1.bf16.msra.mxu0 %v2000_v16 }
  0x58   :  { %233 = vmatmul.mubr.bf16.vlgmr.msra.gmra.mrb[0].mxu0 %v112_v19  ;;  %v2011_v19 = vld [vmem:[#allocation7 + $0x84] ss:$8 sps:$4 sm:$0xff]  }
  0x59   :  { %242 = vmatprep.mubr.bf16.mxu0 %v2178_v0 }
  0x60   :  { %243 = vmatmul.mubr.bf16.gmra.mrb[4].mxu0 %v113_v22  ;;  %v2009_v22 = vld [vmem:[#allocation7 + $0x80] ss:$8 sps:$4 sm:$0xff]  }
  0x61   :  { %252 = vmatprep.mubr.bf16.mxu0 %v2178_v0 }
  0x68   :  { %253 = vmatmul.mubr.bf16.gmra.mrb[8].mxu0 %v114_v25  ;;  %v2017_v25 = vld [vmem:[#allocation7 + $0xa4] ss:$8 sps:$4 sm:$0xff]  }
  0x69   :  { %262 = vmatprep.mubr.bf16.mxu0 %v2178_v0 }
  0x70   :  { %263 = vmatmul.mubr.bf16.gmra.mrb[12].mxu0 %v115_v28  ;;  %v2015_v28 = vld [vmem:[#allocation7 + $0xa0] ss:$8 sps:$4 sm:$0xff]  }
  0x71   :  { %272 = vmatprep.mubr.bf16.mxu0 %v2178_v0 }
  0x78   :  { %273 = vmatmul.mubr.bf16.gmra.mrb[16].mxu0 %v116_v31  ;;  %v2023_v31 = vld [vmem:[#allocation7 + $0xc4] ss:$8 sps:$4 sm:$0xff]  }
  0x79   :  { %282 = vmatprep.mubr.bf16.mxu0 %v2178_v0 }
  0x80   :  { %283 = vmatmul.mubr.bf16.gmra.mrb[20].mxu0 %v117_v34  ;;  %v2021_v34 = vld [vmem:[#allocation7 + $0xc0] ss:$8 sps:$4 sm:$0xff]  }
  0x81   :  { %292 = vmatprep.mubr.bf16.mxu0 %v2178_v0 }
  0x88   :  { %293 = vmatmul.mubr.bf16.gmra.mrb[24].mxu0 %v118_v37  ;;  %v2024_v37 = vld [vmem:[#allocation7 + $0xd0] ss:$8 sps:$4 sm:$0xff]  }
  0x89   :  { %302 = vmatprep.mubr.bf16.mxu0 %v2178_v0 }
  0x90   :  { %303 = vmatmul.mubr.bf16.gmra.mrb[28].mxu0 %v119_v40  ;;  %v2032_v40 = vld [vmem:[#allocation7 + $0xf4] ss:$8 sps:$4 sm:$0xff]  }
  0x91   :  { %1878 = vmatprep.mubr.bf16.mxu0 %v2256_v41 }
 0x12b   :  { %v234_v42 = vpop.f32.mrb[0].mxu0 }
 0x12c   :  { %v2260_v43 = vpop.f32.mrb[1].mxu0 }
 0x12d   :  { %v238_v44 = vpop.f32.mrb[2].mxu0 }
 0x12e   :  { %v313_v45 = vpack.c.bf16 %v238_v44, %v234_v42  ;;  %v2262_v46 = vpop.f32.mrb[3].mxu0  ;;  %v2030_v42 = vld [vmem:[#allocation7 + $0xf0] ss:$8 sps:$4 sm:$0xff]   ;;  %v2317_v44 = vld [vmem:[%s2592_s4] ss:$0 sm:$0xff] }
 0x130   :  { %1830 = vmatprep.subr.bf16.mxu1 %v313_v45 }
 0x131   :  { %1831 = vmatpush3.bf16.msra.mxu1 %v313_v45 }
 0x133   :  { %v244_v47 = vpop.f32.mrb[4].mxu0 }
 0x134   :  { %v2264_v48 = vpop.f32.mrb[5].mxu0 }
 0x135   :  { %v248_v49 = vpop.f32.mrb[6].mxu0 }
 0x136   :  { %v314_v50 = vpack.c.bf16 %v248_v49, %v244_v47  ;;  %v2266_v51 = vpop.f32.mrb[7].mxu0 }
 0x138   :  { %1832 = vmatprep.subr.bf16.mxu1 %v314_v50 }
 0x139   :  { %1833 = vmatpush3.bf16.msra.mxu1 %v314_v50 }
 0x13b   :  { %v254_v52 = vpop.f32.mrb[8].mxu0 }
 0x13c   :  { %v2268_v53 = vpop.f32.mrb[9].mxu0 }
 0x13d   :  { %v258_v54 = vpop.f32.mrb[10].mxu0 }
 0x13e   :  { %v315_v55 = vpack.c.bf16 %v258_v54, %v254_v52  ;;  %v2270_v56 = vpop.f32.mrb[11].mxu0 }
 0x140   :  { %1834 = vmatprep.subr.bf16.mxu1 %v315_v55 }
 0x141   :  { %1835 = vmatpush3.bf16.msra.mxu1 %v315_v55 }
 0x143   :  { %v264_v57 = vpop.f32.mrb[12].mxu0 }
 0x144   :  { %v2272_v58 = vpop.f32.mrb[13].mxu0 }
 0x145   :  { %v268_v59 = vpop.f32.mrb[14].mxu0 }
 0x146   :  { %v316_v60 = vpack.c.bf16 %v268_v59, %v264_v57  ;;  %v2274_v61 = vpop.f32.mrb[15].mxu0 }
 0x148   :  { %1836 = vmatprep.subr.bf16.mxu1 %v316_v60 }
 0x149   :  { %1837 = vmatpush3.bf16.msra.mxu1 %v316_v60 }
 0x14b   :  { %v274_v62 = vpop.f32.mrb[16].mxu0 }
 0x14c   :  { %v2276_v63 = vpop.f32.mrb[17].mxu0 }
 0x14d   :  { %v278_v1 = vpop.f32.mrb[18].mxu0 }
 0x14e   :  { %v317_v2 = vpack.c.bf16 %v278_v1, %v274_v62  ;;  %v2278_v3 = vpop.f32.mrb[19].mxu0 }
 0x150   :  { %1838 = vmatprep.subr.bf16.mxu1 %v317_v2 }
 0x151   :  { %1839 = vmatpush3.bf16.msra.mxu1 %v317_v2 }
 0x153   :  { %v284_v4 = vpop.f32.mrb[20].mxu0 }
 0x154   :  { %v2280_v5 = vpop.f32.mrb[21].mxu0 }
 0x155   :  { %v288_v6 = vpop.f32.mrb[22].mxu0 }
 0x156   :  { %v318_v7 = vpack.c.bf16 %v288_v6, %v284_v4  ;;  %v2282_v8 = vpop.f32.mrb[23].mxu0 }
 0x158   :  { %1840 = vmatprep.subr.bf16.mxu1 %v318_v7 }
 0x159   :  { %1841 = vmatpush3.bf16.msra.mxu1 %v318_v7 }
 0x15b   :  { %v294_v9 = vpop.f32.mrb[24].mxu0 }
 0x15c   :  { %v2284_v10 = vpop.f32.mrb[25].mxu0 }
 0x15d   :  { %v298_v11 = vpop.f32.mrb[26].mxu0 }
 0x15e   :  { %v319_v12 = vpack.c.bf16 %v298_v11, %v294_v9  ;;  %v2286_v13 = vpop.f32.mrb[27].mxu0 }
 0x160   :  { %1842 = vmatprep.subr.bf16.mxu1 %v319_v12 }
 0x161   :  { %1843 = vmatpush3.bf16.msra.mxu1 %v319_v12 }
 0x163   :  { %v304_v14 = vpop.f32.mrb[28].mxu0 }
 0x164   :  { %v2288_v15 = vpop.f32.mrb[29].mxu0 }
 0x165   :  { %v308_v16 = vpop.f32.mrb[30].mxu0 }
 0x166   :  { %v320_v17 = vpack.c.bf16 %v308_v16, %v304_v14  ;;  %v2290_v18 = vpop.f32.mrb[31].mxu0 }
 0x168   :  { %1844 = vmatprep.subr.bf16.mxu1 %v320_v17 }
 0x169   :  { %1845 = vmatpush3.bf16.msra.mxu1 %v320_v17 }
 0x16a   :  { %608 = vmatprep.subr.bf16.mxu1 %v2011_v19 }
 0x16c   :  { %1847 = vmatmul.mubr.bf16.vlgmr.msra.gmra.mrb[0].mxu1 %v2292_v20 }
 0x16d   :  { %1850 = vmatprep.mubr.bf16.mxu1 %v2294_v21  ;;  %609 = vmatpush1.bf16.msra.mxu1 %v2009_v22 }
 0x16e   :  { %610 = vmatprep.subr.bf16.mxu1 %v2014_v23 }
 0x171   :  { %611 = vmatpush1.bf16.msra.mxu1 %v2012_v24 }
 0x172   :  { %612 = vmatprep.subr.bf16.mxu1 %v2017_v25 }
 0x174   :  { %1851 = vmatmul.mubr.bf16.gmra.mrb[4].mxu1 %v2298_v26 }
 0x175   :  { %1854 = vmatprep.mubr.bf16.mxu1 %v2300_v27  ;;  %613 = vmatpush1.bf16.msra.mxu1 %v2015_v28 }
 0x176   :  { %614 = vmatprep.subr.bf16.mxu1 %v2020_v29 }
 0x179   :  { %615 = vmatpush1.bf16.msra.mxu1 %v2018_v30 }
 0x17a   :  { %616 = vmatprep.subr.bf16.mxu1 %v2023_v31 }
 0x17c   :  { %1855 = vmatmul.mubr.bf16.gmra.mrb[8].mxu1 %v2304_v32 }
 0x17d   :  { %1858 = vmatprep.mubr.bf16.mxu1 %v2306_v33  ;;  %617 = vmatpush1.bf16.msra.mxu1 %v2021_v34 }
 0x17e   :  { %618 = vmatprep.subr.bf16.mxu1 %v2026_v36 }
 0x181   :  { %619 = vmatpush1.bf16.msra.mxu1 %v2024_v37 }
 0x182   :  { %620 = vmatprep.subr.bf16.mxu1 %v2029_v38 }
 0x184   :  { %1859 = vmatmul.mubr.bf16.gmra.mrb[12].mxu1 %v2310_v35 }
 0x185   :  { %640 = vmatprep.mubr.bf16.mxu1 %v2178_v0  ;;  %621 = vmatpush1.bf16.msra.mxu1 %v2027_v39 }
 0x186   :  { %622 = vmatprep.subr.bf16.mxu1 %v2032_v40 }
 0x189   :  { %623 = vmatpush1.bf16.msra.mxu1 %v2030_v42 }
 0x23f   :  { %v1848_v45 = vpop.f32.mrb[0].mxu1 }
 0x240   :  { %v412_v47 = vadd.f32 %v1848_v45, %v2264_v48  ;;  %v403_v49 = vpop.f32.mrb[1].mxu1 }
 0x241   :  { %v404_v50 = vadd.f32 %v403_v49, %v2260_v43  ;;  %v1849_v52 = vpop.f32.mrb[2].mxu1 }
 0x242   :  { %v472_v54 = vadd.f32 %v2317_v44, %v412_v47  ;;  %v415_v55 = vadd.f32 %v1849_v52, %v2266_v51  ;;  %v406_v57 = vpop.f32.mrb[3].mxu1 }
 0x243   :  { %v470_v59 = vadd.f32 %v2317_v44, %v404_v50  ;;  %v407_v60 = vadd.f32 %v406_v57, %v2262_v46 }
 0x244   :  { %v473_v62 = vadd.f32 %v2317_v44, %v415_v55  ;;  %v488_v2 = vmax.f32 %v472_v54, 0.0 }
 0x245   :  { %v471_v1 = vadd.f32 %v2317_v44, %v407_v60  ;;  %v486_v48 = vmax.f32 %v470_v59, 0.0 }
 0x246   :  { %v489_v4 = vmax.f32 %v473_v62, 0.0 }
 0x247   :  { %v487_v6 = vmax.f32 %v471_v1, 0.0  ;;  %v1852_v7 = vpop.f32.mrb[4].mxu1 }
 0x248   :  { %v428_v43 = vadd.f32 %v1852_v7, %v2272_v58  ;;  %v419_v9 = vpop.f32.mrb[5].mxu1  ;;  %v521_v11 = vpack.c.bf16 %v489_v4, %v488_v2 }
 0x249   :  { %v520_v12 = vpack.c.bf16 %v487_v6, %v486_v48  ;;  %v420_v51 = vadd.f32 %v419_v9, %v2268_v53  ;;  %v1853_v14 = vpop.f32.mrb[6].mxu1 }
 0x24a   :  { %v476_v16 = vadd.f32 %v2317_v44, %v428_v43  ;;  %v431_v46 = vadd.f32 %v1853_v14, %v2274_v61  ;;  %v422_v17 = vpop.f32.mrb[7].mxu1 }
 0x24b   :  { %v474_v19 = vadd.f32 %v2317_v44, %v420_v51  ;;  %v423_v22 = vadd.f32 %v422_v17, %v2270_v56  ;;  %641 = vmatmul.mubr.bf16.vlgmr.msra.gmra.mrb[16].mxu1 %v520_v12 }
 0x24c   :  { %v477_v23 = vadd.f32 %v2317_v44, %v431_v46  ;;  %650 = vmatprep.mubr.bf16.mxu1 %v2178_v0  ;;  %v492_v24 = vmax.f32 %v476_v16, 0.0 }
 0x24d   :  { %v475_v58 = vadd.f32 %v2317_v44, %v423_v22  ;;  %v490_v53 = vmax.f32 %v474_v19, 0.0 }
 0x24e   :  { %v493_v25 = vmax.f32 %v477_v23, 0.0 }
 0x24f   :  { %v491_v28 = vmax.f32 %v475_v58, 0.0  ;;  %v1856_v29 = vpop.f32.mrb[8].mxu1 }
 0x250   :  { %v444_v30 = vadd.f32 %v1856_v29, %v2280_v5  ;;  %v435_v61 = vpop.f32.mrb[9].mxu1  ;;  %v523_v31 = vpack.c.bf16 %v493_v25, %v492_v24 }
 0x251   :  { %v436_v34 = vadd.f32 %v435_v61, %v2276_v63  ;;  %v1857_v36 = vpop.f32.mrb[10].mxu1  ;;  %v522_v56 = vpack.c.bf16 %v491_v28, %v490_v53 }
 0x252   :  { %v480_v37 = vadd.f32 %v2317_v44, %v444_v30  ;;  %v447_v38 = vadd.f32 %v1857_v36, %v2282_v8  ;;  %v438_v39 = vpop.f32.mrb[11].mxu1 }
 0x253   :  { %v478_v40 = vadd.f32 %v2317_v44, %v436_v34  ;;  %v439_v42 = vadd.f32 %v438_v39, %v2278_v3  ;;  %651 = vmatmul.mubr.bf16.gmra.mrb[20].mxu1 %v521_v11 }
 0x254   :  { %v481_v45 = vadd.f32 %v2317_v44, %v447_v38  ;;  %660 = vmatprep.mubr.bf16.mxu1 %v2178_v0  ;;  %v496_v47 = vmax.f32 %v480_v37, 0.0 }
 0x255   :  { %v479_v5 = vadd.f32 %v2317_v44, %v439_v42  ;;  %v494_v49 = vmax.f32 %v478_v40, 0.0 }
 0x256   :  { %v497_v63 = vmax.f32 %v481_v45, 0.0 }
 0x257   :  { %v495_v50 = vmax.f32 %v479_v5, 0.0  ;;  %v1860_v52 = vpop.f32.mrb[12].mxu1 }
 0x258   :  { %v460_v54 = vadd.f32 %v1860_v52, %v2288_v15  ;;  %v451_v8 = vpop.f32.mrb[13].mxu1  ;;  %v525_v55 = vpack.c.bf16 %v497_v63, %v496_v47 }
 0x259   :  { %v452_v57 = vadd.f32 %v451_v8, %v2284_v10  ;;  %v1861_v59 = vpop.f32.mrb[14].mxu1  ;;  %v524_v3 = vpack.c.bf16 %v495_v50, %v494_v49 }
 0x25a   :  { %v484_v60 = vadd.f32 %v2317_v44, %v460_v54  ;;  %v463_v62 = vadd.f32 %v1861_v59, %v2290_v18  ;;  %v454_v1 = vpop.f32.mrb[15].mxu1  ;;  %v2033_v59 = vld [vmem:[#allocation7 + $0x100] ss:$8 sps:$4 sm:$0xff]  }
 0x25b   :  { %v482_v2 = vadd.f32 %v2317_v44, %v452_v57  ;;  %v455_v4 = vadd.f32 %v454_v1, %v2286_v13  ;;  %661 = vmatmul.mubr.bf16.gmra.mrb[24].mxu1 %v522_v56  ;;  %v2035_v57 = vld [vmem:[#allocation7 + $0x104] ss:$8 sps:$4 sm:$0xff]   ;;  %v2039_v1 = vld [vmem:[#allocation7 + $0x120] ss:$8 sps:$4 sm:$0xff]  }
 0x25c   :  { %v485_v48 = vadd.f32 %v2317_v44, %v463_v62  ;;  %670 = vmatprep.mubr.bf16.mxu1 %v2178_v0  ;;  %v500_v6 = vmax.f32 %v484_v60, 0.0  ;;  %v2036_v60 = vld [vmem:[#allocation7 + $0x110] ss:$8 sps:$4 sm:$0xff]   ;;  %v2041_v62 = vld [vmem:[#allocation7 + $0x124] ss:$8 sps:$4 sm:$0xff]  }
 0x25d   :  { %v483_v15 = vadd.f32 %v2317_v44, %v455_v4  ;;  %v498_v7 = vmax.f32 %v482_v2, 0.0  ;;  %v2044_v2 = vld [vmem:[#allocation7 + $0x134] ss:$8 sps:$4 sm:$0xff]   ;;  %v2042_v4 = vld [vmem:[#allocation7 + $0x130] ss:$8 sps:$4 sm:$0xff]  }
 0x25e   :  { %v501_v10 = vmax.f32 %v485_v48, 0.0  ;;  %v2047_v48 = vld [vmem:[#allocation7 + $0x144] ss:$8 sps:$4 sm:$0xff]  }
 0x25f   :  { %v499_v43 = vmax.f32 %v483_v15, 0.0  ;;  %v2045_v15 = vld [vmem:[#allocation7 + $0x140] ss:$8 sps:$4 sm:$0xff]  }
 0x260   :  { %v527_v9 = vpack.c.bf16 %v501_v10, %v500_v6  ;;  %v2050_v6 = vld [vmem:[#allocation7 + $0x154] ss:$8 sps:$4 sm:$0xff]   ;;  %v2048_v10 = vld [vmem:[#allocation7 + $0x150] ss:$8 sps:$4 sm:$0xff]  }
 0x261   :  { %v526_v11 = vpack.c.bf16 %v499_v43, %v498_v7  ;;  %v2053_v7 = vld [vmem:[#allocation7 + $0x164] ss:$8 sps:$4 sm:$0xff]   ;;  %v2051_v43 = vld [vmem:[#allocation7 + $0x160] ss:$8 sps:$4 sm:$0xff]  }
 0x263   :  { %671 = vmatmul.mubr.bf16.gmra.mrb[28].mxu1 %v523_v31 }
 0x264   :  { %680 = vmatprep.mubr.bf16.mxu1 %v2178_v0 }
 0x26b   :  { %681 = vmatmul.mubr.bf16.gmra.mrb[32].mxu1 %v524_v3  ;;  %v2038_v3 = vld [vmem:[#allocation7 + $0x114] ss:$8 sps:$4 sm:$0xff]  }
 0x26c   :  { %690 = vmatprep.mubr.bf16.mxu1 %v2178_v0 }
 0x273   :  { %691 = vmatmul.mubr.bf16.gmra.mrb[36].mxu1 %v525_v55 }
 0x274   :  { %700 = vmatprep.mubr.bf16.mxu1 %v2178_v0 }
 0x27b   :  { %701 = vmatmul.mubr.bf16.gmra.mrb[40].mxu1 %v526_v11  ;;  %v2054_v11 = vld [vmem:[#allocation7 + $0x170] ss:$8 sps:$4 sm:$0xff]  }
 0x27c   :  { %710 = vmatprep.mubr.bf16.mxu1 %v2178_v0 }
 0x283   :  { %711 = vmatmul.mubr.bf16.gmra.mrb[44].mxu1 %v527_v9  ;;  %v2056_v9 = vld [vmem:[#allocation7 + $0x174] ss:$8 sps:$4 sm:$0xff]  }
 0x284   :  { %1910 = vmatprep.mubr.bf16.mxu1 %v2256_v41 }
 0x31e   :  { %v642_v13 = vpop.f32.mrb[16].mxu1 }
 0x31f   :  { %v2359_v18 = vpop.f32.mrb[17].mxu1 }
 0x320   :  { %v646_v44 = vpop.f32.mrb[18].mxu1 }
 0x321   :  { %v721_v12 = vpack.c.bf16 %v646_v44, %v642_v13  ;;  %v2361_v51 = vpop.f32.mrb[19].mxu1  ;;  %v2402_v13 = vld [vmem:[%s2592_s4 + $0x1] ss:$0 sm:$0xff] }
 0x323   :  { %1862 = vmatprep.subr.bf16.mxu0 %v721_v12 }
 0x324   :  { %1863 = vmatpush3.bf16.msra.mxu0 %v721_v12 }
 0x326   :  { %v652_v14 = vpop.f32.mrb[20].mxu1 }
 0x327   :  { %v2363_v16 = vpop.f32.mrb[21].mxu1 }
 0x328   :  { %v656_v46 = vpop.f32.mrb[22].mxu1 }
 0x329   :  { %v722_v17 = vpack.c.bf16 %v656_v46, %v652_v14  ;;  %v2365_v19 = vpop.f32.mrb[23].mxu1 }
 0x32b   :  { %1864 = vmatprep.subr.bf16.mxu0 %v722_v17 }
 0x32c   :  { %1865 = vmatpush3.bf16.msra.mxu0 %v722_v17 }
 0x32e   :  { %v662_v22 = vpop.f32.mrb[24].mxu1 }
 0x32f   :  { %v2367_v41 = vpop.f32.mrb[25].mxu1 }
 0x330   :  { %v666_v23 = vpop.f32.mrb[26].mxu1 }
 0x331   :  { %v723_v58 = vpack.c.bf16 %v666_v23, %v662_v22  ;;  %v2369_v24 = vpop.f32.mrb[27].mxu1 }
 0x333   :  { %1866 = vmatprep.subr.bf16.mxu0 %v723_v58 }
 0x334   :  { %1867 = vmatpush3.bf16.msra.mxu0 %v723_v58 }
 0x336   :  { %v672_v25 = vpop.f32.mrb[28].mxu1 }
 0x337   :  { %v2371_v53 = vpop.f32.mrb[29].mxu1 }
 0x338   :  { %v676_v28 = vpop.f32.mrb[30].mxu1 }
 0x339   :  { %v724_v29 = vpack.c.bf16 %v676_v28, %v672_v25  ;;  %v2373_v30 = vpop.f32.mrb[31].mxu1 }
 0x33b   :  { %1868 = vmatprep.subr.bf16.mxu0 %v724_v29 }
 0x33c   :  { %1869 = vmatpush3.bf16.msra.mxu0 %v724_v29 }
 0x33e   :  { %v682_v61 = vpop.f32.mrb[32].mxu1 }
 0x33f   :  { %v2375_v31 = vpop.f32.mrb[33].mxu1 }
 0x340   :  { %v686_v34 = vpop.f32.mrb[34].mxu1 }
 0x341   :  { %v725_v36 = vpack.c.bf16 %v686_v34, %v682_v61  ;;  %v2377_v56 = vpop.f32.mrb[35].mxu1 }
 0x343   :  { %1870 = vmatprep.subr.bf16.mxu0 %v725_v36 }
 0x344   :  { %1871 = vmatpush3.bf16.msra.mxu0 %v725_v36 }
 0x346   :  { %v692_v37 = vpop.f32.mrb[36].mxu1 }
 0x347   :  { %v2379_v38 = vpop.f32.mrb[37].mxu1 }
 0x348   :  { %v696_v39 = vpop.f32.mrb[38].mxu1 }
 0x349   :  { %v726_v40 = vpack.c.bf16 %v696_v39, %v692_v37  ;;  %v2381_v42 = vpop.f32.mrb[39].mxu1 }
 0x34b   :  { %1872 = vmatprep.subr.bf16.mxu0 %v726_v40 }
 0x34c   :  { %1873 = vmatpush3.bf16.msra.mxu0 %v726_v40 }
 0x34e   :  { %v702_v45 = vpop.f32.mrb[40].mxu1 }
 0x34f   :  { %v2383_v5 = vpop.f32.mrb[41].mxu1 }
 0x350   :  { %v706_v47 = vpop.f32.mrb[42].mxu1 }
 0x351   :  { %v727_v63 = vpack.c.bf16 %v706_v47, %v702_v45  ;;  %v2385_v49 = vpop.f32.mrb[43].mxu1 }
 0x353   :  { %1874 = vmatprep.subr.bf16.mxu0 %v727_v63 }
 0x354   :  { %1875 = vmatpush3.bf16.msra.mxu0 %v727_v63 }
 0x356   :  { %v712_v50 = vpop.f32.mrb[44].mxu1 }
 0x357   :  { %v2387_v52 = vpop.f32.mrb[45].mxu1 }
 0x358   :  { %v716_v54 = vpop.f32.mrb[46].mxu1 }
 0x359   :  { %v728_v8 = vpack.c.bf16 %v716_v54, %v712_v50  ;;  %v2389_v55 = vpop.f32.mrb[47].mxu1 }
 0x35b   :  { %1876 = vmatprep.subr.bf16.mxu0 %v728_v8 }
 0x35c   :  { %1877 = vmatpush3.bf16.msra.mxu0 %v728_v8 }
 0x35d   :  { %968 = vmatprep.subr.bf16.mxu0 %v2035_v57 }
 0x35f   :  { %1879 = vmatmul.mubr.bf16.vlgmr.msra.gmra.mrb[32].mxu0 %v2292_v20 }
 0x360   :  { %1882 = vmatprep.mubr.bf16.mxu0 %v2294_v21  ;;  %969 = vmatpush1.bf16.msra.mxu0 %v2033_v59 }
 0x361   :  { %970 = vmatprep.subr.bf16.mxu0 %v2038_v3 }
 0x364   :  { %971 = vmatpush1.bf16.msra.mxu0 %v2036_v60 }
 0x365   :  { %972 = vmatprep.subr.bf16.mxu0 %v2041_v62 }
 0x367   :  { %1883 = vmatmul.mubr.bf16.gmra.mrb[36].mxu0 %v2298_v26 }
 0x368   :  { %1886 = vmatprep.mubr.bf16.mxu0 %v2300_v27  ;;  %973 = vmatpush1.bf16.msra.mxu0 %v2039_v1 }
 0x369   :  { %974 = vmatprep.subr.bf16.mxu0 %v2044_v2 }
 0x36c   :  { %975 = vmatpush1.bf16.msra.mxu0 %v2042_v4 }
 0x36d   :  { %976 = vmatprep.subr.bf16.mxu0 %v2047_v48 }
 0x36f   :  { %1887 = vmatmul.mubr.bf16.gmra.mrb[40].mxu0 %v2304_v32 }
 0x370   :  { %1890 = vmatprep.mubr.bf16.mxu0 %v2306_v33  ;;  %977 = vmatpush1.bf16.msra.mxu0 %v2045_v15 }
 0x371   :  { %978 = vmatprep.subr.bf16.mxu0 %v2050_v6 }
 0x374   :  { %979 = vmatpush1.bf16.msra.mxu0 %v2048_v10 }
 0x375   :  { %980 = vmatprep.subr.bf16.mxu0 %v2053_v7 }
 0x377   :  { %1891 = vmatmul.mubr.bf16.gmra.mrb[44].mxu0 %v2310_v35 }
 0x378   :  { %1000 = vmatprep.mubr.bf16.mxu0 %v2178_v0  ;;  %981 = vmatpush1.bf16.msra.mxu0 %v2051_v43 }
 0x379   :  { %982 = vmatprep.subr.bf16.mxu0 %v2056_v9 }
 0x37c   :  { %983 = vmatpush1.bf16.msra.mxu0 %v2054_v11 }
 0x432   :  { %v1880_v44 = vpop.f32.mrb[32].mxu0 }
 0x433   :  { %v772_v12 = vadd.f32 %v1880_v44, %v2363_v16  ;;  %v763_v14 = vpop.f32.mrb[33].mxu0 }
 0x434   :  { %v764_v46 = vadd.f32 %v763_v14, %v2359_v18  ;;  %v1881_v17 = vpop.f32.mrb[34].mxu0 }
 0x435   :  { %v832_v22 = vadd.f32 %v2402_v13, %v772_v12  ;;  %v775_v23 = vadd.f32 %v1881_v17, %v2365_v19  ;;  %v766_v58 = vpop.f32.mrb[35].mxu0 }
 0x436   :  { %v830_v25 = vadd.f32 %v2402_v13, %v764_v46  ;;  %v767_v28 = vadd.f32 %v766_v58, %v2361_v51 }
 0x437   :  { %v833_v29 = vadd.f32 %v2402_v13, %v775_v23  ;;  %v848_v34 = vmax.f32 %v832_v22, 0.0 }
 0x438   :  { %v831_v61 = vadd.f32 %v2402_v13, %v767_v28  ;;  %v846_v16 = vmax.f32 %v830_v25, 0.0 }
 0x439   :  { %v849_v36 = vmax.f32 %v833_v29, 0.0 }
 0x43a   :  { %v847_v37 = vmax.f32 %v831_v61, 0.0  ;;  %v1884_v39 = vpop.f32.mrb[36].mxu0 }
 0x43b   :  { %v788_v18 = vadd.f32 %v1884_v39, %v2371_v53  ;;  %v779_v40 = vpop.f32.mrb[37].mxu0  ;;  %v881_v45 = vpack.c.bf16 %v849_v36, %v848_v34 }
 0x43c   :  { %v880_v47 = vpack.c.bf16 %v847_v37, %v846_v16  ;;  %v780_v19 = vadd.f32 %v779_v40, %v2367_v41  ;;  %v1885_v63 = vpop.f32.mrb[38].mxu0 }
 0x43d   :  { %v836_v50 = vadd.f32 %v2402_v13, %v788_v18  ;;  %v791_v51 = vadd.f32 %v1885_v63, %v2373_v30  ;;  %v782_v54 = vpop.f32.mrb[39].mxu0 }
 0x43e   :  { %v834_v8 = vadd.f32 %v2402_v13, %v780_v19  ;;  %v783_v57 = vadd.f32 %v782_v54, %v2369_v24  ;;  %1001 = vmatmul.mubr.bf16.vlgmr.msra.gmra.mrb[48].mxu0 %v880_v47 }
 0x43f   :  { %v837_v59 = vadd.f32 %v2402_v13, %v791_v51  ;;  %1010 = vmatprep.mubr.bf16.mxu0 %v2178_v0  ;;  %v852_v3 = vmax.f32 %v836_v50, 0.0 }
 0x440   :  { %v835_v53 = vadd.f32 %v2402_v13, %v783_v57  ;;  %v850_v41 = vmax.f32 %v834_v8, 0.0 }
 0x441   :  { %v853_v60 = vmax.f32 %v837_v59, 0.0 }
 0x442   :  { %v851_v62 = vmax.f32 %v835_v53, 0.0  ;;  %v1888_v1 = vpop.f32.mrb[40].mxu0 }
 0x443   :  { %v804_v2 = vadd.f32 %v1888_v1, %v2379_v38  ;;  %v795_v30 = vpop.f32.mrb[41].mxu0  ;;  %v883_v4 = vpack.c.bf16 %v853_v60, %v852_v3 }
 0x444   :  { %v796_v48 = vadd.f32 %v795_v30, %v2375_v31  ;;  %v1889_v15 = vpop.f32.mrb[42].mxu0  ;;  %v882_v24 = vpack.c.bf16 %v851_v62, %v850_v41 }
 0x445   :  { %v840_v6 = vadd.f32 %v2402_v13, %v804_v2  ;;  %v807_v10 = vadd.f32 %v1889_v15, %v2381_v42  ;;  %v798_v7 = vpop.f32.mrb[43].mxu0 }
 0x446   :  { %v838_v43 = vadd.f32 %v2402_v13, %v796_v48  ;;  %v799_v9 = vadd.f32 %v798_v7, %v2377_v56  ;;  %1011 = vmatmul.mubr.bf16.gmra.mrb[52].mxu0 %v881_v45 }
 0x447   :  { %v841_v11 = vadd.f32 %v2402_v13, %v807_v10  ;;  %1020 = vmatprep.mubr.bf16.mxu0 %v2178_v0  ;;  %v856_v44 = vmax.f32 %v840_v6, 0.0 }
 0x448   :  { %v839_v38 = vadd.f32 %v2402_v13, %v799_v9  ;;  %v854_v12 = vmax.f32 %v838_v43, 0.0 }
 0x449   :  { %v857_v31 = vmax.f32 %v841_v11, 0.0 }
 0x44a   :  { %v855_v14 = vmax.f32 %v839_v38, 0.0  ;;  %v1892_v46 = vpop.f32.mrb[44].mxu0 }
 0x44b   :  { %v820_v17 = vadd.f32 %v1892_v46, %v2387_v52  ;;  %v811_v42 = vpop.f32.mrb[45].mxu0  ;;  %v885_v22 = vpack.c.bf16 %v857_v31, %v856_v44 }
 0x44c   :  { %v812_v23 = vadd.f32 %v811_v42, %v2383_v5  ;;  %v1893_v58 = vpop.f32.mrb[46].mxu0  ;;  %v884_v56 = vpack.c.bf16 %v855_v14, %v854_v12 }
 0x44d   :  { %v844_v25 = vadd.f32 %v2402_v13, %v820_v17  ;;  %v823_v28 = vadd.f32 %v1893_v58, %v2389_v55  ;;  %v814_v29 = vpop.f32.mrb[47].mxu0 }
 0x44e   :  { %v842_v61 = vadd.f32 %v2402_v13, %v812_v23  ;;  %v815_v34 = vadd.f32 %v814_v29, %v2385_v49  ;;  %1021 = vmatmul.mubr.bf16.gmra.mrb[56].mxu0 %v882_v24  ;;  %v1223_v49 = vlaneseq }
 0x44f   :  { %v845_v36 = vadd.f32 %v2402_v13, %v823_v28  ;;  %1030 = vmatprep.mubr.bf16.mxu0 %v2178_v0  ;;  %v860_v16 = vmax.f32 %v844_v25, 0.0 }
 0x450   :  { %v843_v52 = vadd.f32 %v2402_v13, %v815_v34  ;;  %v858_v37 = vmax.f32 %v842_v61, 0.0  ;;  %v1224_v55 = vshrl.u32 %v1223_v49, 7  ;;  %v1222_v13 = vld [vmem:[%s2590_s2] sm:$0x3]  ;;  %v2179_v34 = vmov 0.0  }
 0x451   :  { %v861_v5 = vmax.f32 %v845_v36, 0.0  ;;  %v2057_v61 = vld [vmem:[#allocation7 + $0x180] ss:$8 sps:$4 sm:$0xff]   ;;  %1946 = vmatprep.subr.bf16.mxu0 %v2179_v34  ;;  %v2058_v36 = vld [vmem:[#allocation7 + $0x190] ss:$8 sps:$4 sm:$0xff]  }
 0x452   :  { %v859_v39 = vmax.f32 %v843_v52, 0.0  ;;  %v1225_v45 = vsub.s32 0, %v1224_v55  ;;  %v1292_v19 = vsub.s32 1, %v1224_v55  ;;  %v2066_v52 = vld [vmem:[#allocation7 + $0x210] ss:$8 sps:$4 sm:$0xff]  }
 0x453   :  { %v887_v18 = vpack.c.bf16 %v861_v5, %v860_v16  ;;  %v2067_v16 = vld [vmem:[#allocation7 + $0x220] ss:$8 sps:$4 sm:$0xff]   ;;  %v2070_v55 = vld [vmem:[#allocation7 + $0x250] ss:$8 sps:$4 sm:$0xff]  }
 0x454   :  { %v886_v40 = vpack.c.bf16 %v859_v39, %v858_v37  ;;  %v1226_v47 = vrot.slane %v1222_v13, %v1225_v45  ;;  %v1293_v63 = vrot.slane %v1222_v13, %v1292_v19  ;;  %v2068_v39 = vld [vmem:[#allocation7 + $0x230] ss:$8 sps:$4 sm:$0xff]  }
 0x456   :  { %1031 = vmatmul.mubr.bf16.gmra.mrb[60].mxu0 %v883_v4  ;;  %1228 = vbcast.lane.b32.xlu0 %v1226_v47, 256 }
 0x457   :  { %1040 = vmatprep.mubr.bf16.mxu0 %v2178_v0  ;;  %1236 = vbcast.lane.b32.xlu1 %v1226_v47, 272 }
 0x45a   :  { %1232 = vbcast.lane.b32.xlu0 %v1226_v47, 264 }
 0x45b   :  { %1240 = vbcast.lane.b32.xlu1 %v1226_v47, 280 }
 0x45e   :  { %1041 = vmatmul.mubr.bf16.gmra.mrb[64].mxu0 %v884_v56  ;;  %1295 = vbcast.lane.b32.xlu0 %v1293_v63, 256 }
 0x45f   :  { %1050 = vmatprep.mubr.bf16.mxu0 %v2178_v0  ;;  %1299 = vbcast.lane.b32.xlu1 %v1293_v63, 264 }
 0x462   :  { %1303 = vbcast.lane.b32.xlu0 %v1293_v63, 272 }
 0x463   :  { %1307 = vbcast.lane.b32.xlu1 %v1293_v63, 280 }
 0x466   :  { %1051 = vmatmul.mubr.bf16.gmra.mrb[68].mxu0 %v885_v22  ;;  %1244 = vbcast.lane.b32.xlu0 %v1226_v47, 288 }
 0x467   :  { %1060 = vmatprep.mubr.bf16.mxu0 %v2178_v0  ;;  %1248 = vbcast.lane.b32.xlu1 %v1226_v47, 296 }
 0x46a   :  { %1311 = vbcast.lane.b32.xlu0 %v1293_v63, 288 }
 0x46b   :  { %1315 = vbcast.lane.b32.xlu1 %v1293_v63, 296 }
 0x46e   :  { %1061 = vmatmul.mubr.bf16.gmra.mrb[72].mxu0 %v886_v40  ;;  %1252 = vbcast.lane.b32.xlu0 %v1226_v47, 304  ;;  %v2069_v40 = vld [vmem:[#allocation7 + $0x240] ss:$8 sps:$4 sm:$0xff]  }
 0x46f   :  { %1070 = vmatprep.mubr.bf16.mxu0 %v2178_v0  ;;  %1256 = vbcast.lane.b32.xlu1 %v1226_v47, 312 }
 0x472   :  { %1319 = vbcast.lane.b32.xlu0 %v1293_v63, 304 }
 0x473   :  { %1323 = vbcast.lane.b32.xlu1 %v1293_v63, 312 }
 0x476   :  { %1071 = vmatmul.mubr.bf16.gmra.mrb[76].mxu0 %v887_v18  ;;  %1260 = vbcast.lane.b32.xlu0 %v1226_v47, 320 }
 0x477   :  { %1264 = vbcast.lane.b32.xlu1 %v1226_v47, 328  ;;  %1962 = vmatprep.mubr.msk.bf16.mxu0 %vm2180_vm0, %v2179_v34 }
 0x47a   :  { %1327 = vbcast.lane.b32.xlu0 %v1293_v63, 320 }
 0x47b   :  { %1331 = vbcast.lane.b32.xlu1 %v1293_v63, 328 }
 0x47e   :  { %1268 = vbcast.lane.b32.xlu0 %v1226_v47, 336 }
 0x47f   :  { %1272 = vbcast.lane.b32.xlu1 %v1226_v47, 344 }
 0x482   :  { %1335 = vbcast.lane.b32.xlu0 %v1293_v63, 336 }
 0x483   :  { %1339 = vbcast.lane.b32.xlu1 %v1293_v63, 344 }
 0x486   :  { %1276 = vbcast.lane.b32.xlu0 %v1226_v47, 352 }
 0x487   :  { %1280 = vbcast.lane.b32.xlu1 %v1226_v47, 360 }
 0x48a   :  { %1343 = vbcast.lane.b32.xlu0 %v1293_v63, 352 }
 0x48b   :  { %1347 = vbcast.lane.b32.xlu1 %v1293_v63, 360 }
 0x48e   :  { %1284 = vbcast.lane.b32.xlu0 %v1226_v47, 368 }
 0x48f   :  { %1288 = vbcast.lane.b32.xlu1 %v1226_v47, 376  ;;  %v2071_v47 = vld [vmem:[#allocation7 + $0x260] ss:$8 sps:$4 sm:$0xff]  }
 0x492   :  { %1351 = vbcast.lane.b32.xlu0 %v1293_v63, 368 }
 0x493   :  { %1355 = vbcast.lane.b32.xlu1 %v1293_v63, 376 }
 0x4c8   :  { %v1229_v5 = vpop.permute.xlu0 %1228 }
 0x4c9   :  { %v1237_v37 = vpop.permute.xlu1 %1236 }
 0x4cc   :  { %v1233_v18 = vpop.permute.xlu0 %1232 }
 0x4cd   :  { %v1241_v49 = vpop.permute.xlu1 %1240 }
 0x4d0   :  { %v1296_v13 = vpop.permute.xlu0 %1295 }
 0x4d1   :  { %v1300_v45 = vpop.permute.xlu1 %1299 }
 0x4d4   :  { %v1304_v19 = vpop.permute.xlu0 %1303 }
 0x4d5   :  { %v1308_v63 = vpop.permute.xlu1 %1307 }
 0x511   :  { %v1002_v0 = vpop.f32.mrb[48].mxu0 }
 0x512   :  { %v2446_v50 = vpop.f32.mrb[49].mxu0 }
 0x513   :  { %v1006_v51 = vpop.f32.mrb[50].mxu0 }
 0x514   :  { %v1081_v54 = vpack.c.bf16 %v1006_v51, %v1002_v0  ;;  %v2448_v8 = vpop.f32.mrb[51].mxu0  ;;  %v2485_v0 = vpop.permute.xlu0 %1244 }
 0x515   :  { %v2487_v51 = vpop.permute.xlu1 %1248 }
 0x516   :  { %1894 = vmatprep.subr.bf16.mxu1 %v1081_v54 }
 0x517   :  { %1895 = vmatpush3.bf16.msra.mxu1 %v1081_v54 }
 0x518   :  { %v2489_v54 = vpop.permute.xlu0 %1311 }
 0x519   :  { %v1012_v57 = vpop.f32.mrb[52].mxu0 }
 0x51a   :  { %v2450_v59 = vpop.f32.mrb[53].mxu0 }
 0x51b   :  { %v1016_v53 = vpop.f32.mrb[54].mxu0 }
 0x51c   :  { %v1082_v3 = vpack.c.bf16 %v1016_v53, %v1012_v57  ;;  %v2452_v60 = vpop.f32.mrb[55].mxu0  ;;  %v2491_v57 = vpop.permute.xlu1 %1315 }
 0x51d   :  { %v1253_v53 = vpop.permute.xlu0 %1252 }
 0x51e   :  { %1896 = vmatprep.subr.bf16.mxu1 %v1082_v3 }
 0x51f   :  { %1897 = vmatpush3.bf16.msra.mxu1 %v1082_v3 }
 0x520   :  { %v2493_v3 = vpop.permute.xlu1 %1256 }
 0x521   :  { %v1022_v41 = vpop.f32.mrb[56].mxu0 }
 0x522   :  { %v2454_v62 = vpop.f32.mrb[57].mxu0 }
 0x523   :  { %v1026_v1 = vpop.f32.mrb[58].mxu0 }
 0x524   :  { %v1083_v2 = vpack.c.bf16 %v1026_v1, %v1022_v41  ;;  %v2456_v30 = vpop.f32.mrb[59].mxu0  ;;  %v1320_v41 = vpop.permute.xlu0 %1319 }
 0x525   :  { %v2495_v1 = vpop.permute.xlu1 %1323 }
 0x526   :  { %1898 = vmatprep.subr.bf16.mxu1 %v1083_v2 }
 0x527   :  { %1899 = vmatpush3.bf16.msra.mxu1 %v1083_v2 }
 0x528   :  { %v2497_v2 = vpop.permute.xlu0 %1260 }
 0x529   :  { %v1032_v4 = vpop.f32.mrb[60].mxu0 }
 0x52a   :  { %v2458_v48 = vpop.f32.mrb[61].mxu0 }
 0x52b   :  { %v1036_v15 = vpop.f32.mrb[62].mxu0 }
 0x52c   :  { %v1084_v24 = vpack.c.bf16 %v1036_v15, %v1032_v4  ;;  %v2460_v6 = vpop.f32.mrb[63].mxu0  ;;  %v2499_v4 = vpop.permute.xlu1 %1264 }
 0x52d   :  { %v2501_v15 = vpop.permute.xlu0 %1327 }
 0x52e   :  { %1900 = vmatprep.subr.bf16.mxu1 %v1084_v24 }
 0x52f   :  { %1901 = vmatpush3.bf16.msra.mxu1 %v1084_v24 }
 0x530   :  { %v2503_v24 = vpop.permute.xlu1 %1331 }
 0x531   :  { %v1042_v10 = vpop.f32.mrb[64].mxu0 }
 0x532   :  { %v2462_v7 = vpop.f32.mrb[65].mxu0 }
 0x533   :  { %v1046_v43 = vpop.f32.mrb[66].mxu0 }
 0x534   :  { %v1085_v9 = vpack.c.bf16 %v1046_v43, %v1042_v10  ;;  %v2464_v11 = vpop.f32.mrb[67].mxu0  ;;  %v2508_v10 = vld [vmem:[%s2592_s4 + $0x2] ss:$0 sm:$0xff] }
 0x536   :  { %1902 = vmatprep.subr.bf16.mxu1 %v1085_v9 }
 0x537   :  { %1903 = vmatpush3.bf16.msra.mxu1 %v1085_v9  ;;  %v2510_v9 = vpop.permute.xlu0 %1268 }
 0x539   :  { %v1052_v38 = vpop.f32.mrb[68].mxu0 }
 0x53a   :  { %v2466_v44 = vpop.f32.mrb[69].mxu0 }
 0x53b   :  { %v1056_v31 = vpop.f32.mrb[70].mxu0 }
 0x53c   :  { %v1086_v12 = vpack.c.bf16 %v1056_v31, %v1052_v38  ;;  %v2468_v14 = vpop.f32.mrb[71].mxu0 }
 0x53e   :  { %1904 = vmatprep.subr.bf16.mxu1 %v1086_v12 }
 0x53f   :  { %1905 = vmatpush3.bf16.msra.mxu1 %v1086_v12 }
 0x541   :  { %v1062_v46 = vpop.f32.mrb[72].mxu0 }
 0x542   :  { %v2470_v17 = vpop.f32.mrb[73].mxu0 }
 0x543   :  { %v1066_v42 = vpop.f32.mrb[74].mxu0 }
 0x544   :  { %v1087_v22 = vpack.c.bf16 %v1066_v42, %v1062_v46  ;;  %v2472_v23 = vpop.f32.mrb[75].mxu0  ;;  %v2514_v42 = vpop.permute.xlu1 %1272 }
 0x546   :  { %1906 = vmatprep.subr.bf16.mxu1 %v1087_v22 }
 0x547   :  { %1907 = vmatpush3.bf16.msra.mxu1 %v1087_v22 }
 0x549   :  { %v1072_v58 = vpop.f32.mrb[76].mxu0 }
 0x54a   :  { %v2474_v56 = vpop.f32.mrb[77].mxu0 }
 0x54b   :  { %v1076_v25 = vpop.f32.mrb[78].mxu0 }
 0x54c   :  { %v1088_v28 = vpack.c.bf16 %v1076_v25, %v1072_v58  ;;  %v2476_v29 = vpop.f32.mrb[79].mxu0 }
 0x54e   :  { %1908 = vmatprep.subr.bf16.mxu1 %v1088_v28 }
 0x54f   :  { %1909 = vmatpush3.bf16.msra.mxu1 %v1088_v28 }
 0x550   :  { %1926 = vmatprep.subr.bf16.mxu1 %v2179_v34 }
 0x552   :  { %1911 = vmatmul.mubr.bf16.vlgmr.msra.gmra.mrb[48].mxu1 %v2292_v20  ;;  %v2059_v20 = vld [vmem:[#allocation7 + $0x1a0] ss:$8 sps:$4 sm:$0xff]  }
 0x553   :  { %1914 = vmatprep.mubr.bf16.mxu1 %v2294_v21  ;;  %1927 = vmatpush3.bf16.msra.mxu1 %v2057_v61  ;;  %v2060_v21 = vld [vmem:[#allocation7 + $0x1b0] ss:$8 sps:$4 sm:$0xff]  }
 0x554   :  { %1928 = vmatprep.subr.bf16.mxu1 %v2179_v34 }
 0x557   :  { %1929 = vmatpush3.bf16.msra.mxu1 %v2058_v36 }
 0x558   :  { %1930 = vmatprep.subr.bf16.mxu1 %v2179_v34 }
 0x55a   :  { %1915 = vmatmul.mubr.bf16.gmra.mrb[52].mxu1 %v2298_v26  ;;  %v2061_v26 = vld [vmem:[#allocation7 + $0x1c0] ss:$8 sps:$4 sm:$0xff]  }
 0x55b   :  { %1918 = vmatprep.mubr.bf16.mxu1 %v2300_v27  ;;  %1931 = vmatpush3.bf16.msra.mxu1 %v2059_v20  ;;  %v2062_v27 = vld [vmem:[#allocation7 + $0x1d0] ss:$8 sps:$4 sm:$0xff]  }
 0x55c   :  { %1932 = vmatprep.subr.bf16.mxu1 %v2179_v34 }
 0x55f   :  { %1933 = vmatpush3.bf16.msra.mxu1 %v2060_v21  ;;  %v2522_v21 = vpop.permute.xlu0 %1335 }
 0x560   :  { %1934 = vmatprep.subr.bf16.mxu1 %v2179_v34 }
 0x562   :  { %1919 = vmatmul.mubr.bf16.gmra.mrb[56].mxu1 %v2304_v32  ;;  %v2063_v32 = vld [vmem:[#allocation7 + $0x1e0] ss:$8 sps:$4 sm:$0xff]  }
 0x563   :  { %1922 = vmatprep.mubr.bf16.mxu1 %v2306_v33  ;;  %1935 = vmatpush3.bf16.msra.mxu1 %v2061_v26  ;;  %v2064_v33 = vld [vmem:[#allocation7 + $0x1f0] ss:$8 sps:$4 sm:$0xff]  }
 0x564   :  { %1936 = vmatprep.subr.bf16.mxu1 %v2179_v34 }
 0x567   :  { %1937 = vmatpush3.bf16.msra.mxu1 %v2062_v27 }
 0x568   :  { %1938 = vmatprep.subr.bf16.mxu1 %v2179_v34 }
 0x56a   :  { %1923 = vmatmul.mubr.bf16.gmra.mrb[60].mxu1 %v2310_v35  ;;  %v2065_v35 = vld [vmem:[#allocation7 + $0x200] ss:$8 sps:$4 sm:$0xff]  }
 0x56b   :  { %1939 = vmatpush3.bf16.msra.mxu1 %v2063_v32  ;;  %1942 = vmatprep.mubr.msk.bf16.mxu1 %vm2180_vm0, %v2179_v34 }
 0x56c   :  { %1940 = vmatprep.subr.bf16.mxu1 %v2179_v34  ;;  %1947 = vmatpush3.bf16.msra.mxu0 %v2065_v35 }
 0x56d   :  { %1948 = vmatprep.subr.bf16.mxu0 %v2179_v34 }
 0x56f   :  { %1941 = vmatpush3.bf16.msra.mxu1 %v2064_v33 }
 0x570   :  { %1949 = vmatpush3.bf16.msra.mxu0 %v2066_v52  ;;  %v2524_v52 = vpop.permute.xlu1 %1339 }
 0x571   :  { %1950 = vmatprep.subr.bf16.mxu0 %v2179_v34 }
 0x574   :  { %1951 = vmatpush3.bf16.msra.mxu0 %v2067_v16 }
 0x575   :  { %1952 = vmatprep.subr.bf16.mxu0 %v2179_v34 }
 0x578   :  { %1953 = vmatpush3.bf16.msra.mxu0 %v2068_v39 }
 0x579   :  { %1954 = vmatprep.subr.bf16.mxu0 %v2179_v34 }
 0x57c   :  { %1955 = vmatpush3.bf16.msra.mxu0 %v2069_v40 }
 0x57d   :  { %1956 = vmatprep.subr.bf16.mxu0 %v2179_v34 }
 0x580   :  { %1957 = vmatpush3.bf16.msra.mxu0 %v2070_v55 }
 0x581   :  { %1958 = vmatprep.subr.bf16.mxu0 %v2179_v34 }
 0x584   :  { %1959 = vmatpush3.bf16.msra.mxu0 %v2071_v47 }
 0x585   :  { %1960 = vmatprep.subr.bf16.mxu0 %v2179_v34 }
 0x625   :  { %v1912_v43 = vpop.f32.mrb[48].mxu1 }
 0x626   :  { %v1132_v38 = vadd.f32 %v1912_v43, %v2450_v59  ;;  %v1123_v31 = vpop.f32.mrb[49].mxu1 }
 0x627   :  { %v1124_v12 = vadd.f32 %v1123_v31, %v2446_v50  ;;  %v1913_v46 = vpop.f32.mrb[50].mxu1 }
 0x628   :  { %v1192_v22 = vadd.f32 %v2508_v10, %v1132_v38  ;;  %v1135_v58 = vadd.f32 %v1913_v46, %v2452_v60  ;;  %v1126_v25 = vpop.f32.mrb[51].mxu1 }
 0x629   :  { %v1190_v28 = vadd.f32 %v2508_v10, %v1124_v12  ;;  %v1127_v61 = vadd.f32 %v1126_v25, %v2448_v8 }
 0x62a   :  { %v1208_v34 = vmax.f32 %v1192_v22, 0.0  ;;  %v1193_v36 = vadd.f32 %v2508_v10, %v1135_v58  ;;  %v2536_v58 = vpop.permute.xlu1 %1280 }
 0x62b   :  { %v1206_v20 = vmax.f32 %v1190_v28, 0.0  ;;  %v1191_v59 = vadd.f32 %v2508_v10, %v1127_v61 }
 0x62c   :  { %v1359_v50 = vmul.f32 %v1237_v37, %v1208_v34  ;;  %v1375_v26 = vmul.f32 %v1304_v19, %v1208_v34  ;;  %v1209_v27 = vmax.f32 %v1193_v36, 0.0 }
 0x62d   :  { %v1357_v32 = vmul.f32 %v1229_v5, %v1206_v20  ;;  %v1373_v33 = vmul.f32 %v1296_v13, %v1206_v20  ;;  %v1207_v35 = vmax.f32 %v1191_v59, 0.0  ;;  %v1916_v60 = vpop.f32.mrb[52].mxu1 }
 0x62e   :  { %v1360_v16 = vmul.f32 %v1241_v49, %v1209_v27  ;;  %v1376_v39 = vmul.f32 %v1308_v63, %v1209_v27  ;;  %v1148_v8 = vadd.f32 %v1916_v60, %v2458_v48  ;;  %v1139_v40 = vpop.f32.mrb[53].mxu1  ;;  %v2531_v63 = vpop.permute.xlu0 %1276 }
 0x62f   :  { %v1389_v55 = vmax.f32 %v1357_v32, %v1359_v50  ;;  %v1410_v47 = vmax.f32 %v1373_v33, %v1375_v26  ;;  %v1358_v43 = vmul.f32 %v1233_v18, %v1207_v35  ;;  %v1374_v38 = vmul.f32 %v1300_v45, %v1207_v35  ;;  %v1917_v31 = vpop.f32.mrb[54].mxu1 }
 0x630   :  { %v1196_v37 = vadd.f32 %v2508_v10, %v1148_v8  ;;  %v1140_v19 = vadd.f32 %v1139_v40, %v2454_v62  ;;  %v1151_v5 = vadd.f32 %v1917_v31, %v2460_v6  ;;  %v1142_v13 = vpop.f32.mrb[55].mxu1 }
 0x631   :  { %v1390_v12 = vmax.f32 %v1358_v43, %v1360_v16  ;;  %v1411_v46 = vmax.f32 %v1374_v38, %v1376_v39  ;;  %v1143_v49 = vadd.f32 %v1142_v13, %v2456_v30 }
 0x632   :  { %v1212_v48 = vmax.f32 %v1196_v37, 0.0  ;;  %v1194_v22 = vadd.f32 %v2508_v10, %v1140_v19  ;;  %v1197_v18 = vadd.f32 %v2508_v10, %v1151_v5 }
 0x633   :  { %v1195_v45 = vadd.f32 %v2508_v10, %v1143_v49 }
 0x634   :  { %v1210_v25 = vmax.f32 %v1194_v22, 0.0  ;;  %v1213_v62 = vmax.f32 %v1197_v18, 0.0  ;;  %v1363_v28 = vmul.f32 %v1253_v53, %v1212_v48  ;;  %v1379_v34 = vmul.f32 %v1320_v41, %v1212_v48  ;;  %v1344_v53 = vpop.permute.xlu0 %1343 }
 0x635   :  { %v1211_v6 = vmax.f32 %v1195_v45, 0.0  ;;  %v1920_v61 = vpop.f32.mrb[56].mxu1 }
 0x636   :  { %v1361_v36 = vmul.f32 %v2485_v0, %v1210_v25  ;;  %v1377_v30 = vmul.f32 %v2489_v54, %v1210_v25  ;;  %v1364_v20 = vmul.f32 %v2493_v3, %v1213_v62  ;;  %v1155_v59 = vpop.f32.mrb[57].mxu1  ;;  %v1164_v27 = vadd.f32 %v1920_v61, %v2466_v44 }
 0x637   :  { %v1362_v50 = vmul.f32 %v2487_v51, %v1211_v6  ;;  %v1378_v26 = vmul.f32 %v2491_v57, %v1211_v6  ;;  %v1156_v32 = vadd.f32 %v1155_v59, %v2462_v7  ;;  %v1921_v33 = vpop.f32.mrb[58].mxu1  ;;  %v1380_v41 = vmul.f32 %v2495_v1, %v1213_v62  ;;  %v1348_v57 = vpop.permute.xlu1 %1347 }
 0x638   :  { %v1391_v35 = vmax.f32 %v1389_v55, %v1361_v36  ;;  %v1412_v60 = vmax.f32 %v1410_v47, %v1377_v30  ;;  %v1167_v0 = vadd.f32 %v1921_v33, %v2468_v14  ;;  %v1158_v54 = vpop.f32.mrb[59].mxu1  ;;  %v1200_v39 = vadd.f32 %v2508_v10, %v1164_v27  ;;  %v1285_v5 = vpop.permute.xlu0 %1284 }
 0x639   :  { %v1392_v16 = vmax.f32 %v1390_v12, %v1362_v50  ;;  %v1413_v3 = vmax.f32 %v1411_v46, %v1378_v26  ;;  %v1198_v51 = vadd.f32 %v2508_v10, %v1156_v32  ;;  %v1159_v40 = vadd.f32 %v1158_v54, %v2464_v11 }
 0x63a   :  { %v1393_v8 = vmax.f32 %v1391_v35, %v1363_v28  ;;  %v1414_v44 = vmax.f32 %v1412_v60, %v1379_v34  ;;  %v1201_v7 = vadd.f32 %v2508_v10, %v1167_v0  ;;  %v1216_v55 = vmax.f32 %v1200_v39, 0.0 }
 0x63b   :  { %v1214_v47 = vmax.f32 %v1198_v51, 0.0  ;;  %v1394_v43 = vmax.f32 %v1392_v16, %v1364_v20  ;;  %v1415_v1 = vmax.f32 %v1413_v3, %v1380_v41  ;;  %v1199_v14 = vadd.f32 %v2508_v10, %v1159_v40 }
 0x63c   :  { %v1217_v38 = vmax.f32 %v1201_v7, 0.0  ;;  %v1367_v13 = vmul.f32 %v2510_v9, %v1216_v55  ;;  %v1383_v12 = vmul.f32 %v2522_v21, %v1216_v55  ;;  %v1352_v59 = vpop.permute.xlu0 %1351 }
 0x63d   :  { %v1365_v31 = vmul.f32 %v2497_v2, %v1214_v47  ;;  %v1381_v37 = vmul.f32 %v2501_v15, %v1214_v47  ;;  %v1924_v19 = vpop.f32.mrb[60].mxu1  ;;  %v1215_v46 = vmax.f32 %v1199_v14, 0.0  ;;  %v1289_v2 = vpop.permute.xlu1 %1288 }
 0x63e   :  { %v1180_v11 = vadd.f32 %v1924_v19, %v2474_v56  ;;  %v1171_v49 = vpop.f32.mrb[61].mxu1  ;;  %v1368_v18 = vmul.f32 %v2514_v42, %v1217_v38 }
 0x63f   :  { %v1395_v48 = vmax.f32 %v1393_v8, %v1365_v31  ;;  %v1416_v22 = vmax.f32 %v1414_v44, %v1381_v37  ;;  %v1172_v45 = vadd.f32 %v1171_v49, %v2470_v17  ;;  %v1925_v25 = vpop.f32.mrb[62].mxu1  ;;  %v1366_v15 = vmul.f32 %v2499_v4, %v1215_v46 }
 0x640   :  { %v1382_v62 = vmul.f32 %v2503_v24, %v1215_v46  ;;  %v1204_v9 = vadd.f32 %v2508_v10, %v1180_v11  ;;  %v1183_v21 = vadd.f32 %v1925_v25, %v2476_v29  ;;  %v1174_v28 = vpop.f32.mrb[63].mxu1  ;;  %v1384_v4 = vmul.f32 %v2524_v52, %v1217_v38 }
 0x641   :  { %v1202_v56 = vadd.f32 %v2508_v10, %v1172_v45  ;;  %v1397_v6 = vmax.f32 %v1395_v48, %v1367_v13  ;;  %v1175_v61 = vadd.f32 %v1174_v28, %v2472_v23  ;;  %v1418_v34 = vmax.f32 %v1416_v22, %v1383_v12  ;;  %v1356_v33 = vpop.permute.xlu1 %1355  ;;  %v2072_v48 = vld [vmem:[#allocation7 + $0x270] ss:$8 sps:$4 sm:$0xff]   ;;  %v1745_v22 = vld [vmem:[%s2592_s4 + $0x3] ss:$0 sm:$0xff] }
 0x642   :  { %v1396_v42 = vmax.f32 %v1394_v43, %v1366_v15  ;;  %v1417_v36 = vmax.f32 %v1415_v1, %v1382_v62  ;;  %v1220_v17 = vmax.f32 %v1204_v9, 0.0  ;;  %v1205_v30 = vadd.f32 %v2508_v10, %v1183_v21  ;;  %1961 = vmatpush3.bf16.msra.mxu0 %v2072_v48  ;;  %v1754_v21 = vld [vmem:[%s2592_s4 + $0x4] ss:$0 sm:$0xff] }
 0x643   :  { %v1218_v20 = vmax.f32 %v1202_v56, 0.0  ;;  %v1203_v24 = vadd.f32 %v2508_v10, %v1175_v61 }
 0x644   :  { %v1221_v50 = vmax.f32 %v1205_v30, 0.0  ;;  %v1398_v29 = vmax.f32 %v1396_v42, %v1368_v18  ;;  %v1419_v23 = vmax.f32 %v1417_v36, %v1384_v4  ;;  %v1371_v35 = vmul.f32 %v1285_v5, %v1220_v17 }
 0x645   :  { %v1369_v26 = vmul.f32 %v2531_v63, %v1218_v20  ;;  %v1385_v27 = vmul.f32 %v1344_v53, %v1218_v20  ;;  %v1219_v32 = vmax.f32 %v1203_v24, 0.0  ;;  %v1387_v60 = vmul.f32 %v1352_v59, %v1220_v17 }
 0x646   :  { %v1372_v52 = vmul.f32 %v1289_v2, %v1221_v50  ;;  %v1388_v3 = vmul.f32 %v1356_v33, %v1221_v50 }
 0x647   :  { %v1399_v41 = vmax.f32 %v1397_v6, %v1369_v26  ;;  %v1370_v0 = vmul.f32 %v2536_v58, %v1219_v32  ;;  %v1386_v54 = vmul.f32 %v1348_v57, %v1219_v32  ;;  %v1420_v16 = vmax.f32 %v1418_v34, %v1385_v27 }
 0x649   :  { %v1401_v39 = vmax.f32 %v1399_v41, %v1371_v35  ;;  %v1400_v10 = vmax.f32 %v1398_v29, %v1370_v0  ;;  %v1422_v51 = vmax.f32 %v1420_v16, %v1387_v60  ;;  %v1421_v8 = vmax.f32 %v1419_v23, %v1386_v54 }
 0x64b   :  { %v1402_v44 = vmax.f32 %v1400_v10, %v1372_v52  ;;  %v1423_v7 = vmax.f32 %v1421_v8, %v1388_v3 }
 0x64d   :  { %v1403_v63 = vmax.f32 %v1401_v39, %v1402_v44  ;;  %v1424_v53 = vmax.f32 %v1422_v51, %v1423_v7 }
 0x64f   :  { %v1404_v40 = vrot.slane %v1403_v63, 4  ;;  %v1425_v55 = vrot.slane %v1424_v53, 4 }
 0x651   :  { %v1405_v47 = vmax.f32 %v1403_v63, %v1404_v40  ;;  %v1426_v43 = vmax.f32 %v1424_v53, %v1425_v55 }
 0x653   :  { %v1406_v1 = vrot.slane %v1405_v47, 2  ;;  %v1427_v38 = vrot.slane %v1426_v43, 2 }
 0x655   :  { %v1407_v14 = vmax.f32 %v1405_v47, %v1406_v1  ;;  %v1428_v58 = vmax.f32 %v1426_v43, %v1427_v38 }
 0x657   :  { %v1408_v57 = vrot.slane %v1407_v14, 1  ;;  %v1429_v31 = vrot.slane %v1428_v58, 1 }
 0x659   :  { %v1409_v37 = vmax.f32 %v1407_v14, %v1408_v57  ;;  %v1430_v19 = vmax.f32 %v1428_v58, %v1429_v31 }
 0x65b   :  { %v1448_v5 = vpack.c.bf16 %v1409_v37, %v1409_v37  ;;  %v1449_v13 = vpack.c.bf16 %v1430_v19, %v1430_v19 }
 0x65d   :  { %v1457_v12 = vunpack.c.l.b16 %v1448_v5  ;;  %v1458_v46 = vunpack.c.l.b16 %v1449_v13 }
 0x65f   :  { %v1460_v11 = vsel %vm1459_vm1, %v1458_v46, %v1457_v12 }
 0x660   :  { %v1461_v49 = vpack.c.b16 %v1460_v11, %v1460_v11 }
 0x662   :  { %1943 = vmatmul.mubr.bf16.vlgmr.msra.gmra.mrb[64].mxu1 %v1461_v49 }
 0x735   :  { %v1545_v18 = vpop.f32.mrb[64].mxu1 }
 0x736   :  { %v1546_v45 = vadd.f32 %v1745_v22, %v1545_v18  ;;  %v1944_v25 = vpop.f32.mrb[65].mxu1 }
 0x737   :  { %v1548_v2 = vpop.f32.mrb[66].mxu1 }
 0x738   :  { %v1551_v15 = vmax.f32 %v1546_v45, 0.0  ;;  %v1945_v62 = vpop.f32.mrb[67].mxu1 }
 0x73a   :  { %v1569_v9 = vpack.c.bf16 %v1551_v15, %v1551_v15 }
 0x73c   :  { %1963 = vmatmul.mubr.bf16.vlgmr.msra.gmra.mrb[80].mxu0 %v1569_v9 }
 0x80f   :  { %v1657_v28 = vpop.f32.mrb[80].mxu0 }
 0x810   :  { %v1658_v56 = vadd.f32 %v1754_v21, %v1657_v28  ;;  %v1964_v6 = vpop.f32.mrb[81].mxu0 }
 0x811   :  { %v1660_v61 = vpop.f32.mrb[82].mxu0 }
 0x812   :  { %v1763_v34 = vmul.f32 -1.442695, %v1658_v56  ;;  %v1965_v42 = vpop.f32.mrb[83].mxu0 }
 0x814   :  { %2073 = vpow2.f32 %v1763_v34 }
 0x81e   :  { %v2074_v36 = vpop.eup %2073 }
 0x81f   :  { %v1666_v17 = vadd.f32 1.0, %v2074_v36 }
 0x821   :  { %2075 = vrcp.f32 %v1666_v17 }
 0x82b   :  { %v2076_v30 = vpop.eup %2075 }
 0x82c   :  { %1669 = vst [vmem:[#allocation8] sm:$0x3] %v2076_v30 }
 0x82d   :  { %2154 = shalt.err (!%p2151_p0)
}
 0x82e   :  { %s2155_s19 = scalar_lea.hbm %s2593_s5, 32 }
 0x82f   :  { %p2156_p1 = scmp.ne.s32.totalorder %s2593_s5, %s2155_s19  ;;  %p2159_p2 = scmp.lt.u32.totalorder %s2155_s19, %s2593_s5 }
 0x831   :  { %p2161_p3 = pnand %p2159_p2, %p2156_p1 }
 0x833   :  { %2164 = shalt.err (!%p2161_p3)
}
 0x834   :  { %1679 = dma.vmem_to_hbm [thread:$0]  %s1677_s1, 32, %s2593_s5, [#allocation4]  }
 0x835   :  { %2169 = dma.done.wait [#allocation4], 32  }
 0x836   :  { %2170 = vsyncadd [#allocation4], 4294967264 }
 0x837   :  { %1683 = vsyncpa [#allocation3], 1 }
 0x838   :  { %1684 = vsyncpa [#allocation6], 1 }
 0x839   :  { %1685 = vsyncpa [#allocation4], 1 }

</bundles_post_ra>
